<compile_context>
chip_gen: v7x
topology: tpu7x:2x2x1
jax: 0.10.0
libtpu: 0.0.40
codegen_flags: <defaults>
</compile_context>

<pallas_src>
import functools

import jax
import jax.numpy as jnp
from jax.experimental import pallas as pl
from jax.experimental.pallas import tpu as pltpu

# ---------------- model config (small, consistent with the module) ----------
INPUT_SIZE = 4
HIDDEN_SIZE = 32
NUM_LAYERS = 2
OUTPUT_SIZE = 3
N_AHEAD = 2
BATCH = 2
SEQ_LEN = 8


def _round_up(x, m):
    return (x + m - 1) // m * m


# ------------------------- weight-slab layout --------------------------------
def make_slab_layout(input_size, hidden_size, num_layers):
    """All segments are 8-row aligned; slab lane width is 4*H (== 128 for H=32)."""
    H = hidden_size
    G = 4 * H
    assert H % 8 == 0, "hidden_size must be a multiple of 8"
    assert G % 128 == 0, "4*hidden_size must be lane-aligned (multiple of 128)"
    din_pad = _round_up(input_size, 8)
    layout = {}
    r = 0
    for l in range(num_layers):
        din_l = din_pad if l == 0 else H
        layout[f"w_ih{l}"] = (r, din_l)
        r += din_l
        layout[f"w_hh{l}"] = (r, H)
        r += H
    layout["fc_w"] = (r, H)
    r += H
    layout["bias"] = (r, num_layers + 1)   # b0, b1, ..., fc_b (one row each)
    r += _round_up(num_layers + 1, 8)
    return layout, r, G, din_pad


# ---------------------------- Pallas kernel ----------------------------------
def _make_basic_lstm_kernel(layout, num_layers, B_pad, T, H, G):
    """Refs: x (T*B_pad, din_pad), slab (rows, G), out (B_pad, G)."""

    def kernel(x_ref, w_ref, out_ref):
        def seg(name):
            r, n = layout[name]
            return w_ref[r:r + n, :]

        br, _ = layout["bias"]

        # ---- layer 0: hoisted input projection, bias folded in ----
        x_all = x_ref[...]                                          # (T*Bp, din_pad)
        xproj = jnp.dot(x_all, seg("w_ih0"),
                        preferred_element_type=jnp.float32) \
                + w_ref[br:br + 1, :]                               # (T*Bp, G)

        w_hh = [seg(f"w_hh{l}") for l in range(num_layers)]
        w_ih = [None] + [seg(f"w_ih{l}") for l in range(1, num_layers)]
        # Hoisted bias broadcasts (layers >= 1 only; layer 0 bias is in xproj).
        bias_full = [None] + [
            jnp.broadcast_to(w_ref[br + l:br + l + 1, :], (B_pad, G))
            for l in range(1, num_layers)
        ]

        h = [jnp.zeros((B_pad, H), jnp.float32) for _ in range(num_layers)]
        c = [jnp.zeros((B_pad, H), jnp.float32) for _ in range(num_layers)]

        def cell(gates, c_prev):
            # Two full-vreg EUP ops over the packed (B_pad, 4H) gates.
            # PyTorch gate order: i, f, g, o.
            sig = jax.nn.sigmoid(gates)
            tnh = jnp.tanh(gates)
            i_g = sig[:, 0 * H:1 * H]
            f_g = sig[:, 1 * H:2 * H]
            g_g = tnh[:, 2 * H:3 * H]
            o_g = sig[:, 3 * H:4 * H]
            c_new = f_g * c_prev + i_g * g_g
            h_new = o_g * jnp.tanh(c_new)
            return h_new, c_new

        # (layer, time) wavefront, statically unrolled: layer l step t only
        # depends on (l, t-1) and (l-1, t) -> critical path ~ T + L - 1 matmuls.
        for t in range(T):
            g0 = xproj[t * B_pad:(t + 1) * B_pad, :] + jnp.dot(
                h[0], w_hh[0], preferred_element_type=jnp.float32)
            h[0], c[0] = cell(g0, c[0])
            for l in range(1, num_layers):
                gl = (jnp.dot(h[l - 1], w_ih[l],
                              preferred_element_type=jnp.float32)
                      + jnp.dot(h[l], w_hh[l],
                                preferred_element_type=jnp.float32)
                      + bias_full[l])
                h[l], c[l] = cell(gl, c[l])

        # Dropout(p=0.3): identity in eval mode.

        # ---- FC head on the last timestep's hidden state (lane-dense store) ----
        fc_w = seg("fc_w")                                          # (H, G) zero-padded lanes
        fc_b = w_ref[br + num_layers:br + num_layers + 1, :]        # (1, G)
        logits = jnp.dot(h[-1], fc_w,
                         preferred_element_type=jnp.float32) + fc_b # (B_pad, G)
        out_ref[...] = logits.astype(out_ref.dtype)

    return kernel


# ------------------------- one-time weight preparation ------------------------
def prepare_params(params, *, input_size, hidden_size, num_layers,
                   output_size, n_ahead):
    """Transpose weights, fold b_ih+b_hh, zero-pad, and pack into ONE slab."""
    H = hidden_size
    out_dim = output_size * n_ahead
    layout, total_rows, G, din_pad = make_slab_layout(
        input_size, hidden_size, num_layers)
    slab = jnp.zeros((total_rows, G), jnp.float32)
    br, _ = layout["bias"]
    for l in range(num_layers):
        w_ih, w_hh, b_ih, b_hh = params[f"lstm_l{l}"]
        r, _ = layout[f"w_ih{l}"]
        w_ih_t = jnp.transpose(w_ih).astype(jnp.float32)            # (din_l, G)
        slab = slab.at[r:r + w_ih_t.shape[0], :].set(w_ih_t)
        r, _ = layout[f"w_hh{l}"]
        slab = slab.at[r:r + H, :].set(jnp.transpose(w_hh).astype(jnp.float32))
        slab = slab.at[br + l, :].set((b_ih + b_hh).astype(jnp.float32))
    fc_w, fc_b = params["fc"]
    r, _ = layout["fc_w"]
    slab = slab.at[r:r + H, :out_dim].set(jnp.transpose(fc_w).astype(jnp.float32))
    slab = slab.at[br + num_layers, :out_dim].set(fc_b.astype(jnp.float32))
    return slab, layout, din_pad


# ------------------------------ wrapper --------------------------------------
def basic_lstm_forward(x, slab, *, layout, din_pad, hidden_size, num_layers,
                       output_size, n_ahead):
    B, T, Din = x.shape
    H = hidden_size
    G = 4 * H
    out_dim = output_size * n_ahead
    B_pad = _round_up(max(B, 8), 8)

    # Layout plumbing in XLA (free): time-major + pad batch/feature dims.
    xt = jnp.transpose(x, (1, 0, 2)).astype(jnp.float32)            # (T, B, Din)
    xt = jnp.pad(xt, ((0, 0), (0, B_pad - B), (0, din_pad - Din)))
    xt = xt.reshape(T * B_pad, din_pad)

    kernel = _make_basic_lstm_kernel(layout, num_layers, B_pad, T, H, G)
    vmem_spec = pl.BlockSpec(memory_space=pltpu.MemorySpace.VMEM)

    out = pl.pallas_call(
        kernel,
        out_shape=jax.ShapeDtypeStruct((B_pad, G), jnp.float32),
        in_specs=[vmem_spec, vmem_spec],
        out_specs=vmem_spec,
    )(xt, slab)

    return out[:B, :out_dim].reshape(B, n_ahead, output_size)


# --------------------------- pure-JAX reference -------------------------------
def reference_forward(x, params, *, num_layers, hidden_size, output_size, n_ahead):
    B, T, _ = x.shape
    H = hidden_size
    seq = x.astype(jnp.float32)
    for l in range(num_layers):
        w_ih, w_hh, b_ih, b_hh = params[f"lstm_l{l}"]
        h = jnp.zeros((B, H), jnp.float32)
        c = jnp.zeros((B, H), jnp.float32)
        hs = []
        for t in range(T):
            g = seq[:, t, :] @ w_ih.T + h @ w_hh.T + b_ih + b_hh
            i_g = jax.nn.sigmoid(g[:, :H])
            f_g = jax.nn.sigmoid(g[:, H:2 * H])
            g_g = jnp.tanh(g[:, 2 * H:3 * H])
            o_g = jax.nn.sigmoid(g[:, 3 * H:])
            c = f_g * c + i_g * g_g
            h = o_g * jnp.tanh(c)
            hs.append(h)
        seq = jnp.stack(hs, axis=1)
    fc_w, fc_b = params["fc"]
    out = seq[:, -1, :] @ fc_w.T + fc_b          # dropout is identity in eval
    return out.reshape(B, n_ahead, output_size)


# ------------------------------ param init ------------------------------------
def init_params(key, input_size, hidden_size, num_layers, output_size, n_ahead):
    H = hidden_size
    out_dim = output_size * n_ahead
    params = {}
    k = 1.0 / jnp.sqrt(jnp.float32(H))

    def u(key, shape, scale):
        return jax.random.uniform(key, shape, jnp.float32, -scale, scale)

    keys = jax.random.split(key, num_layers * 4 + 2)
    ki = 0
    for l in range(num_layers):
        din = input_size if l == 0 else H
        w_ih = u(keys[ki], (4 * H, din), k); ki += 1
        w_hh = u(keys[ki], (4 * H, H), k); ki += 1
        b_ih = u(keys[ki], (4 * H,), k); ki += 1
        b_hh = u(keys[ki], (4 * H,), k); ki += 1
        params[f"lstm_l{l}"] = (w_ih, w_hh, b_ih, b_hh)
    params["fc"] = (u(keys[ki], (out_dim, H), k), u(keys[ki + 1], (out_dim,), k))
    return params


# --------------------------------- main ----------------------------------------
if __name__ == "__main__":
    key = jax.random.PRNGKey(0)
    k_param, k_x = jax.random.split(key)

    params = init_params(k_param, INPUT_SIZE, HIDDEN_SIZE, NUM_LAYERS,
                         OUTPUT_SIZE, N_AHEAD)
    x = jax.random.normal(k_x, (BATCH, SEQ_LEN, INPUT_SIZE), jnp.float32)

    # One-time weight prep (transpose / bias fold / slab packing).
    slab, layout, din_pad = prepare_params(
        params, input_size=INPUT_SIZE, hidden_size=HIDDEN_SIZE,
        num_layers=NUM_LAYERS, output_size=OUTPUT_SIZE, n_ahead=N_AHEAD)

    fwd = functools.partial(basic_lstm_forward,
                            layout=layout, din_pad=din_pad,
                            hidden_size=HIDDEN_SIZE, num_layers=NUM_LAYERS,
                            output_size=OUTPUT_SIZE, n_ahead=N_AHEAD)
    out = jax.jit(fwd)(x, slab)
    out = jax.block_until_ready(out)

    ref = reference_forward(x, params, num_layers=NUM_LAYERS,
                            hidden_size=HIDDEN_SIZE, output_size=OUTPUT_SIZE,
                            n_ahead=N_AHEAD)
    assert out.shape == (BATCH, N_AHEAD, OUTPUT_SIZE), out.shape
    assert jnp.allclose(out, ref, rtol=1e-3, atol=1e-3), (
        f"max abs diff {jnp.max(jnp.abs(out - ref))}")

    print("KERNEL_OK")
</pallas_src>

<mosaic_0001>
module attributes {stable_mosaic.version = 11 : i64} {
  func.func @kernel(%arg0: memref<64x8xf32, #tpu.memory_space<vmem>>, %arg1: memref<144x128xf32, #tpu.memory_space<vmem>>, %arg2: memref<8x128xf32, #tpu.memory_space<vmem>>) attributes {dimension_semantics = [], scalar_prefetch = 0 : i64, scratch_operands = 0 : i64, tpu.core_type = #tpu.core_type<tc>} {
    %c0 = arith.constant 0 : index
    %c0_0 = arith.constant 0 : index
    %0 = vector.load %arg0[%c0, %c0_0] : memref<64x8xf32, #tpu.memory_space<vmem>>, vector<64x8xf32>
    %c0_1 = arith.constant 0 : index
    %c0_2 = arith.constant 0 : index
    %1 = vector.load %arg1[%c0_1, %c0_2] : memref<144x128xf32, #tpu.memory_space<vmem>>, vector<8x128xf32>
    %cst = arith.constant dense<0.000000e+00> : vector<64x128xf32>
    %2 = tpu.matmul %0, %1, %cst {dimension_numbers = #tpu.dot_dimension_numbers<[1], [0], [0], [1], [0, 0, 1, 1], [], []>} : vector<64x8xf32>, vector<8x128xf32>, vector<64x128xf32> -> vector<64x128xf32>
    %c136 = arith.constant 136 : index
    %c0_3 = arith.constant 0 : index
    %3 = vector.load %arg1[%c136, %c0_3] : memref<144x128xf32, #tpu.memory_space<vmem>>, vector<1x128xf32>
    %4 = vector.broadcast %3 : vector<1x128xf32> to vector<64x128xf32>
    %5 = arith.addf %2, %4 : vector<64x128xf32>
    %c8 = arith.constant 8 : index
    %c0_4 = arith.constant 0 : index
    %6 = vector.load %arg1[%c8, %c0_4] : memref<144x128xf32, #tpu.memory_space<vmem>>, vector<32x128xf32>
    %c72 = arith.constant 72 : index
    %c0_5 = arith.constant 0 : index
    %7 = vector.load %arg1[%c72, %c0_5] : memref<144x128xf32, #tpu.memory_space<vmem>>, vector<32x128xf32>
    %c40 = arith.constant 40 : index
    %c0_6 = arith.constant 0 : index
    %8 = vector.load %arg1[%c40, %c0_6] : memref<144x128xf32, #tpu.memory_space<vmem>>, vector<32x128xf32>
    %c137 = arith.constant 137 : index
    %c0_7 = arith.constant 0 : index
    %9 = vector.load %arg1[%c137, %c0_7] : memref<144x128xf32, #tpu.memory_space<vmem>>, vector<1x128xf32>
    %10 = vector.shape_cast %9 : vector<1x128xf32> to vector<1x128xf32>
    %11 = vector.broadcast %10 : vector<1x128xf32> to vector<8x128xf32>
    %cst_8 = arith.constant 0.000000e+00 : f32
    %12 = vector.broadcast %cst_8 : f32 to vector<8x32xf32>
    %cst_9 = arith.constant 0.000000e+00 : f32
    %13 = vector.broadcast %cst_9 : f32 to vector<8x32xf32>
    %cst_10 = arith.constant 0.000000e+00 : f32
    %14 = vector.broadcast %cst_10 : f32 to vector<8x32xf32>
    %cst_11 = arith.constant 0.000000e+00 : f32
    %15 = vector.broadcast %cst_11 : f32 to vector<8x32xf32>
    %16 = vector.extract_strided_slice %5 {offsets = [0, 0], sizes = [8, 128], strides = [1, 1]} : vector<64x128xf32> to vector<8x128xf32>
    %cst_12 = arith.constant dense<0.000000e+00> : vector<8x128xf32>
    %17 = tpu.matmul %12, %6, %cst_12 {dimension_numbers = #tpu.dot_dimension_numbers<[1], [0], [0], [1], [0, 0, 1, 1], [], []>} : vector<8x32xf32>, vector<32x128xf32>, vector<8x128xf32> -> vector<8x128xf32>
    %18 = arith.addf %16, %17 : vector<8x128xf32>
    %19 = arith.negf %18 : vector<8x128xf32>
    %20 = math.exp %19 : vector<8x128xf32>
    %cst_13 = arith.constant 1.000000e+00 : f32
    %21 = vector.broadcast %cst_13 : f32 to vector<8x128xf32>
    %22 = arith.addf %21, %20 : vector<8x128xf32>
    %23 = arith.divf %21, %22 : vector<8x128xf32>
    %24 = math.tanh %18 : vector<8x128xf32>
    %25 = vector.extract_strided_slice %23 {offsets = [0, 0], sizes = [8, 32], strides = [1, 1]} : vector<8x128xf32> to vector<8x32xf32>
    %26 = vector.extract_strided_slice %23 {offsets = [0, 32], sizes = [8, 32], strides = [1, 1]} : vector<8x128xf32> to vector<8x32xf32>
    %27 = vector.extract_strided_slice %24 {offsets = [0, 64], sizes = [8, 32], strides = [1, 1]} : vector<8x128xf32> to vector<8x32xf32>
    %28 = vector.extract_strided_slice %23 {offsets = [0, 96], sizes = [8, 32], strides = [1, 1]} : vector<8x128xf32> to vector<8x32xf32>
    %29 = arith.mulf %26, %14 : vector<8x32xf32>
    %30 = arith.mulf %25, %27 : vector<8x32xf32>
    %31 = arith.addf %29, %30 : vector<8x32xf32>
    %32 = math.tanh %31 : vector<8x32xf32>
    %33 = arith.mulf %28, %32 : vector<8x32xf32>
    %cst_14 = arith.constant dense<0.000000e+00> : vector<8x128xf32>
    %34 = tpu.matmul %33, %8, %cst_14 {dimension_numbers = #tpu.dot_dimension_numbers<[1], [0], [0], [1], [0, 0, 1, 1], [], []>} : vector<8x32xf32>, vector<32x128xf32>, vector<8x128xf32> -> vector<8x128xf32>
    %cst_15 = arith.constant dense<0.000000e+00> : vector<8x128xf32>
    %35 = tpu.matmul %13, %7, %cst_15 {dimension_numbers = #tpu.dot_dimension_numbers<[1], [0], [0], [1], [0, 0, 1, 1], [], []>} : vector<8x32xf32>, vector<32x128xf32>, vector<8x128xf32> -> vector<8x128xf32>
    %36 = arith.addf %34, %35 : vector<8x128xf32>
    %37 = arith.addf %36, %11 : vector<8x128xf32>
    %38 = arith.negf %37 : vector<8x128xf32>
    %39 = math.exp %38 : vector<8x128xf32>
    %cst_16 = arith.constant 1.000000e+00 : f32
    %40 = vector.broadcast %cst_16 : f32 to vector<8x128xf32>
    %41 = arith.addf %40, %39 : vector<8x128xf32>
    %42 = arith.divf %40, %41 : vector<8x128xf32>
    %43 = math.tanh %37 : vector<8x128xf32>
    %44 = vector.extract_strided_slice %42 {offsets = [0, 0], sizes = [8, 32], strides = [1, 1]} : vector<8x128xf32> to vector<8x32xf32>
    %45 = vector.extract_strided_slice %42 {offsets = [0, 32], sizes = [8, 32], strides = [1, 1]} : vector<8x128xf32> to vector<8x32xf32>
    %46 = vector.extract_strided_slice %43 {offsets = [0, 64], sizes = [8, 32], strides = [1, 1]} : vector<8x128xf32> to vector<8x32xf32>
    %47 = vector.extract_strided_slice %42 {offsets = [0, 96], sizes = [8, 32], strides = [1, 1]} : vector<8x128xf32> to vector<8x32xf32>
    %48 = arith.mulf %45, %15 : vector<8x32xf32>
    %49 = arith.mulf %44, %46 : vector<8x32xf32>
    %50 = arith.addf %48, %49 : vector<8x32xf32>
    %51 = math.tanh %50 : vector<8x32xf32>
    %52 = arith.mulf %47, %51 : vector<8x32xf32>
    %53 = vector.extract_strided_slice %5 {offsets = [8, 0], sizes = [8, 128], strides = [1, 1]} : vector<64x128xf32> to vector<8x128xf32>
    %cst_17 = arith.constant dense<0.000000e+00> : vector<8x128xf32>
    %54 = tpu.matmul %33, %6, %cst_17 {dimension_numbers = #tpu.dot_dimension_numbers<[1], [0], [0], [1], [0, 0, 1, 1], [], []>} : vector<8x32xf32>, vector<32x128xf32>, vector<8x128xf32> -> vector<8x128xf32>
    %55 = arith.addf %53, %54 : vector<8x128xf32>
    %56 = arith.negf %55 : vector<8x128xf32>
    %57 = math.exp %56 : vector<8x128xf32>
    %cst_18 = arith.constant 1.000000e+00 : f32
    %58 = vector.broadcast %cst_18 : f32 to vector<8x128xf32>
    %59 = arith.addf %58, %57 : vector<8x128xf32>
    %60 = arith.divf %58, %59 : vector<8x128xf32>
    %61 = math.tanh %55 : vector<8x128xf32>
    %62 = vector.extract_strided_slice %60 {offsets = [0, 0], sizes = [8, 32], strides = [1, 1]} : vector<8x128xf32> to vector<8x32xf32>
    %63 = vector.extract_strided_slice %60 {offsets = [0, 32], sizes = [8, 32], strides = [1, 1]} : vector<8x128xf32> to vector<8x32xf32>
    %64 = vector.extract_strided_slice %61 {offsets = [0, 64], sizes = [8, 32], strides = [1, 1]} : vector<8x128xf32> to vector<8x32xf32>
    %65 = vector.extract_strided_slice %60 {offsets = [0, 96], sizes = [8, 32], strides = [1, 1]} : vector<8x128xf32> to vector<8x32xf32>
    %66 = arith.mulf %63, %31 : vector<8x32xf32>
    %67 = arith.mulf %62, %64 : vector<8x32xf32>
    %68 = arith.addf %66, %67 : vector<8x32xf32>
    %69 = math.tanh %68 : vector<8x32xf32>
    %70 = arith.mulf %65, %69 : vector<8x32xf32>
    %cst_19 = arith.constant dense<0.000000e+00> : vector<8x128xf32>
    %71 = tpu.matmul %70, %8, %cst_19 {dimension_numbers = #tpu.dot_dimension_numbers<[1], [0], [0], [1], [0, 0, 1, 1], [], []>} : vector<8x32xf32>, vector<32x128xf32>, vector<8x128xf32> -> vector<8x128xf32>
    %cst_20 = arith.constant dense<0.000000e+00> : vector<8x128xf32>
    %72 = tpu.matmul %52, %7, %cst_20 {dimension_numbers = #tpu.dot_dimension_numbers<[1], [0], [0], [1], [0, 0, 1, 1], [], []>} : vector<8x32xf32>, vector<32x128xf32>, vector<8x128xf32> -> vector<8x128xf32>
    %73 = arith.addf %71, %72 : vector<8x128xf32>
    %74 = arith.addf %73, %11 : vector<8x128xf32>
    %75 = arith.negf %74 : vector<8x128xf32>
    %76 = math.exp %75 : vector<8x128xf32>
    %cst_21 = arith.constant 1.000000e+00 : f32
    %77 = vector.broadcast %cst_21 : f32 to vector<8x128xf32>
    %78 = arith.addf %77, %76 : vector<8x128xf32>
    %79 = arith.divf %77, %78 : vector<8x128xf32>
    %80 = math.tanh %74 : vector<8x128xf32>
    %81 = vector.extract_strided_slice %79 {offsets = [0, 0], sizes = [8, 32], strides = [1, 1]} : vector<8x128xf32> to vector<8x32xf32>
    %82 = vector.extract_strided_slice %79 {offsets = [0, 32], sizes = [8, 32], strides = [1, 1]} : vector<8x128xf32> to vector<8x32xf32>
    %83 = vector.extract_strided_slice %80 {offsets = [0, 64], sizes = [8, 32], strides = [1, 1]} : vector<8x128xf32> to vector<8x32xf32>
    %84 = vector.extract_strided_slice %79 {offsets = [0, 96], sizes = [8, 32], strides = [1, 1]} : vector<8x128xf32> to vector<8x32xf32>
    %85 = arith.mulf %82, %50 : vector<8x32xf32>
    %86 = arith.mulf %81, %83 : vector<8x32xf32>
    %87 = arith.addf %85, %86 : vector<8x32xf32>
    %88 = math.tanh %87 : vector<8x32xf32>
    %89 = arith.mulf %84, %88 : vector<8x32xf32>
    %90 = vector.extract_strided_slice %5 {offsets = [16, 0], sizes = [8, 128], strides = [1, 1]} : vector<64x128xf32> to vector<8x128xf32>
    %cst_22 = arith.constant dense<0.000000e+00> : vector<8x128xf32>
    %91 = tpu.matmul %70, %6, %cst_22 {dimension_numbers = #tpu.dot_dimension_numbers<[1], [0], [0], [1], [0, 0, 1, 1], [], []>} : vector<8x32xf32>, vector<32x128xf32>, vector<8x128xf32> -> vector<8x128xf32>
    %92 = arith.addf %90, %91 : vector<8x128xf32>
    %93 = arith.negf %92 : vector<8x128xf32>
    %94 = math.exp %93 : vector<8x128xf32>
    %cst_23 = arith.constant 1.000000e+00 : f32
    %95 = vector.broadcast %cst_23 : f32 to vector<8x128xf32>
    %96 = arith.addf %95, %94 : vector<8x128xf32>
    %97 = arith.divf %95, %96 : vector<8x128xf32>
    %98 = math.tanh %92 : vector<8x128xf32>
    %99 = vector.extract_strided_slice %97 {offsets = [0, 0], sizes = [8, 32], strides = [1, 1]} : vector<8x128xf32> to vector<8x32xf32>
    %100 = vector.extract_strided_slice %97 {offsets = [0, 32], sizes = [8, 32], strides = [1, 1]} : vector<8x128xf32> to vector<8x32xf32>
    %101 = vector.extract_strided_slice %98 {offsets = [0, 64], sizes = [8, 32], strides = [1, 1]} : vector<8x128xf32> to vector<8x32xf32>
    %102 = vector.extract_strided_slice %97 {offsets = [0, 96], sizes = [8, 32], strides = [1, 1]} : vector<8x128xf32> to vector<8x32xf32>
    %103 = arith.mulf %100, %68 : vector<8x32xf32>
    %104 = arith.mulf %99, %101 : vector<8x32xf32>
    %105 = arith.addf %103, %104 : vector<8x32xf32>
    %106 = math.tanh %105 : vector<8x32xf32>
    %107 = arith.mulf %102, %106 : vector<8x32xf32>
    %cst_24 = arith.constant dense<0.000000e+00> : vector<8x128xf32>
    %108 = tpu.matmul %107, %8, %cst_24 {dimension_numbers = #tpu.dot_dimension_numbers<[1], [0], [0], [1], [0, 0, 1, 1], [], []>} : vector<8x32xf32>, vector<32x128xf32>, vector<8x128xf32> -> vector<8x128xf32>
    %cst_25 = arith.constant dense<0.000000e+00> : vector<8x128xf32>
    %109 = tpu.matmul %89, %7, %cst_25 {dimension_numbers = #tpu.dot_dimension_numbers<[1], [0], [0], [1], [0, 0, 1, 1], [], []>} : vector<8x32xf32>, vector<32x128xf32>, vector<8x128xf32> -> vector<8x128xf32>
    %110 = arith.addf %108, %109 : vector<8x128xf32>
    %111 = arith.addf %110, %11 : vector<8x128xf32>
    %112 = arith.negf %111 : vector<8x128xf32>
    %113 = math.exp %112 : vector<8x128xf32>
    %cst_26 = arith.constant 1.000000e+00 : f32
    %114 = vector.broadcast %cst_26 : f32 to vector<8x128xf32>
    %115 = arith.addf %114, %113 : vector<8x128xf32>
    %116 = arith.divf %114, %115 : vector<8x128xf32>
    %117 = math.tanh %111 : vector<8x128xf32>
    %118 = vector.extract_strided_slice %116 {offsets = [0, 0], sizes = [8, 32], strides = [1, 1]} : vector<8x128xf32> to vector<8x32xf32>
    %119 = vector.extract_strided_slice %116 {offsets = [0, 32], sizes = [8, 32], strides = [1, 1]} : vector<8x128xf32> to vector<8x32xf32>
    %120 = vector.extract_strided_slice %117 {offsets = [0, 64], sizes = [8, 32], strides = [1, 1]} : vector<8x128xf32> to vector<8x32xf32>
    %121 = vector.extract_strided_slice %116 {offsets = [0, 96], sizes = [8, 32], strides = [1, 1]} : vector<8x128xf32> to vector<8x32xf32>
    %122 = arith.mulf %119, %87 : vector<8x32xf32>
    %123 = arith.mulf %118, %120 : vector<8x32xf32>
    %124 = arith.addf %122, %123 : vector<8x32xf32>
    %125 = math.tanh %124 : vector<8x32xf32>
    %126 = arith.mulf %121, %125 : vector<8x32xf32>
    %127 = vector.extract_strided_slice %5 {offsets = [24, 0], sizes = [8, 128], strides = [1, 1]} : vector<64x128xf32> to vector<8x128xf32>
    %cst_27 = arith.constant dense<0.000000e+00> : vector<8x128xf32>
    %128 = tpu.matmul %107, %6, %cst_27 {dimension_numbers = #tpu.dot_dimension_numbers<[1], [0], [0], [1], [0, 0, 1, 1], [], []>} : vector<8x32xf32>, vector<32x128xf32>, vector<8x128xf32> -> vector<8x128xf32>
    %129 = arith.addf %127, %128 : vector<8x128xf32>
    %130 = arith.negf %129 : vector<8x128xf32>
    %131 = math.exp %130 : vector<8x128xf32>
    %cst_28 = arith.constant 1.000000e+00 : f32
    %132 = vector.broadcast %cst_28 : f32 to vector<8x128xf32>
    %133 = arith.addf %132, %131 : vector<8x128xf32>
    %134 = arith.divf %132, %133 : vector<8x128xf32>
    %135 = math.tanh %129 : vector<8x128xf32>
    %136 = vector.extract_strided_slice %134 {offsets = [0, 0], sizes = [8, 32], strides = [1, 1]} : vector<8x128xf32> to vector<8x32xf32>
    %137 = vector.extract_strided_slice %134 {offsets = [0, 32], sizes = [8, 32], strides = [1, 1]} : vector<8x128xf32> to vector<8x32xf32>
    %138 = vector.extract_strided_slice %135 {offsets = [0, 64], sizes = [8, 32], strides = [1, 1]} : vector<8x128xf32> to vector<8x32xf32>
    %139 = vector.extract_strided_slice %134 {offsets = [0, 96], sizes = [8, 32], strides = [1, 1]} : vector<8x128xf32> to vector<8x32xf32>
    %140 = arith.mulf %137, %105 : vector<8x32xf32>
    %141 = arith.mulf %136, %138 : vector<8x32xf32>
    %142 = arith.addf %140, %141 : vector<8x32xf32>
    %143 = math.tanh %142 : vector<8x32xf32>
    %144 = arith.mulf %139, %143 : vector<8x32xf32>
    %cst_29 = arith.constant dense<0.000000e+00> : vector<8x128xf32>
    %145 = tpu.matmul %144, %8, %cst_29 {dimension_numbers = #tpu.dot_dimension_numbers<[1], [0], [0], [1], [0, 0, 1, 1], [], []>} : vector<8x32xf32>, vector<32x128xf32>, vector<8x128xf32> -> vector<8x128xf32>
    %cst_30 = arith.constant dense<0.000000e+00> : vector<8x128xf32>
    %146 = tpu.matmul %126, %7, %cst_30 {dimension_numbers = #tpu.dot_dimension_numbers<[1], [0], [0], [1], [0, 0, 1, 1], [], []>} : vector<8x32xf32>, vector<32x128xf32>, vector<8x128xf32> -> vector<8x128xf32>
    %147 = arith.addf %145, %146 : vector<8x128xf32>
    %148 = arith.addf %147, %11 : vector<8x128xf32>
    %149 = arith.negf %148 : vector<8x128xf32>
    %150 = math.exp %149 : vector<8x128xf32>
    %cst_31 = arith.constant 1.000000e+00 : f32
    %151 = vector.broadcast %cst_31 : f32 to vector<8x128xf32>
    %152 = arith.addf %151, %150 : vector<8x128xf32>
    %153 = arith.divf %151, %152 : vector<8x128xf32>
    %154 = math.tanh %148 : vector<8x128xf32>
    %155 = vector.extract_strided_slice %153 {offsets = [0, 0], sizes = [8, 32], strides = [1, 1]} : vector<8x128xf32> to vector<8x32xf32>
    %156 = vector.extract_strided_slice %153 {offsets = [0, 32], sizes = [8, 32], strides = [1, 1]} : vector<8x128xf32> to vector<8x32xf32>
    %157 = vector.extract_strided_slice %154 {offsets = [0, 64], sizes = [8, 32], strides = [1, 1]} : vector<8x128xf32> to vector<8x32xf32>
    %158 = vector.extract_strided_slice %153 {offsets = [0, 96], sizes = [8, 32], strides = [1, 1]} : vector<8x128xf32> to vector<8x32xf32>
    %159 = arith.mulf %156, %124 : vector<8x32xf32>
    %160 = arith.mulf %155, %157 : vector<8x32xf32>
    %161 = arith.addf %159, %160 : vector<8x32xf32>
    %162 = math.tanh %161 : vector<8x32xf32>
    %163 = arith.mulf %158, %162 : vector<8x32xf32>
    %164 = vector.extract_strided_slice %5 {offsets = [32, 0], sizes = [8, 128], strides = [1, 1]} : vector<64x128xf32> to vector<8x128xf32>
    %cst_32 = arith.constant dense<0.000000e+00> : vector<8x128xf32>
    %165 = tpu.matmul %144, %6, %cst_32 {dimension_numbers = #tpu.dot_dimension_numbers<[1], [0], [0], [1], [0, 0, 1, 1], [], []>} : vector<8x32xf32>, vector<32x128xf32>, vector<8x128xf32> -> vector<8x128xf32>
    %166 = arith.addf %164, %165 : vector<8x128xf32>
    %167 = arith.negf %166 : vector<8x128xf32>
    %168 = math.exp %167 : vector<8x128xf32>
    %cst_33 = arith.constant 1.000000e+00 : f32
    %169 = vector.broadcast %cst_33 : f32 to vector<8x128xf32>
    %170 = arith.addf %169, %168 : vector<8x128xf32>
    %171 = arith.divf %169, %170 : vector<8x128xf32>
    %172 = math.tanh %166 : vector<8x128xf32>
    %173 = vector.extract_strided_slice %171 {offsets = [0, 0], sizes = [8, 32], strides = [1, 1]} : vector<8x128xf32> to vector<8x32xf32>
    %174 = vector.extract_strided_slice %171 {offsets = [0, 32], sizes = [8, 32], strides = [1, 1]} : vector<8x128xf32> to vector<8x32xf32>
    %175 = vector.extract_strided_slice %172 {offsets = [0, 64], sizes = [8, 32], strides = [1, 1]} : vector<8x128xf32> to vector<8x32xf32>
    %176 = vector.extract_strided_slice %171 {offsets = [0, 96], sizes = [8, 32], strides = [1, 1]} : vector<8x128xf32> to vector<8x32xf32>
    %177 = arith.mulf %174, %142 : vector<8x32xf32>
    %178 = arith.mulf %173, %175 : vector<8x32xf32>
    %179 = arith.addf %177, %178 : vector<8x32xf32>
    %180 = math.tanh %179 : vector<8x32xf32>
    %181 = arith.mulf %176, %180 : vector<8x32xf32>
    %cst_34 = arith.constant dense<0.000000e+00> : vector<8x128xf32>
    %182 = tpu.matmul %181, %8, %cst_34 {dimension_numbers = #tpu.dot_dimension_numbers<[1], [0], [0], [1], [0, 0, 1, 1], [], []>} : vector<8x32xf32>, vector<32x128xf32>, vector<8x128xf32> -> vector<8x128xf32>
    %cst_35 = arith.constant dense<0.000000e+00> : vector<8x128xf32>
    %183 = tpu.matmul %163, %7, %cst_35 {dimension_numbers = #tpu.dot_dimension_numbers<[1], [0], [0], [1], [0, 0, 1, 1], [], []>} : vector<8x32xf32>, vector<32x128xf32>, vector<8x128xf32> -> vector<8x128xf32>
    %184 = arith.addf %182, %183 : vector<8x128xf32>
    %185 = arith.addf %184, %11 : vector<8x128xf32>
    %186 = arith.negf %185 : vector<8x128xf32>
    %187 = math.exp %186 : vector<8x128xf32>
    %cst_36 = arith.constant 1.000000e+00 : f32
    %188 = vector.broadcast %cst_36 : f32 to vector<8x128xf32>
    %189 = arith.addf %188, %187 : vector<8x128xf32>
    %190 = arith.divf %188, %189 : vector<8x128xf32>
    %191 = math.tanh %185 : vector<8x128xf32>
    %192 = vector.extract_strided_slice %190 {offsets = [0, 0], sizes = [8, 32], strides = [1, 1]} : vector<8x128xf32> to vector<8x32xf32>
    %193 = vector.extract_strided_slice %190 {offsets = [0, 32], sizes = [8, 32], strides = [1, 1]} : vector<8x128xf32> to vector<8x32xf32>
    %194 = vector.extract_strided_slice %191 {offsets = [0, 64], sizes = [8, 32], strides = [1, 1]} : vector<8x128xf32> to vector<8x32xf32>
    %195 = vector.extract_strided_slice %190 {offsets = [0, 96], sizes = [8, 32], strides = [1, 1]} : vector<8x128xf32> to vector<8x32xf32>
    %196 = arith.mulf %193, %161 : vector<8x32xf32>
    %197 = arith.mulf %192, %194 : vector<8x32xf32>
    %198 = arith.addf %196, %197 : vector<8x32xf32>
    %199 = math.tanh %198 : vector<8x32xf32>
    %200 = arith.mulf %195, %199 : vector<8x32xf32>
    %201 = vector.extract_strided_slice %5 {offsets = [40, 0], sizes = [8, 128], strides = [1, 1]} : vector<64x128xf32> to vector<8x128xf32>
    %cst_37 = arith.constant dense<0.000000e+00> : vector<8x128xf32>
    %202 = tpu.matmul %181, %6, %cst_37 {dimension_numbers = #tpu.dot_dimension_numbers<[1], [0], [0], [1], [0, 0, 1, 1], [], []>} : vector<8x32xf32>, vector<32x128xf32>, vector<8x128xf32> -> vector<8x128xf32>
    %203 = arith.addf %201, %202 : vector<8x128xf32>
    %204 = arith.negf %203 : vector<8x128xf32>
    %205 = math.exp %204 : vector<8x128xf32>
    %cst_38 = arith.constant 1.000000e+00 : f32
    %206 = vector.broadcast %cst_38 : f32 to vector<8x128xf32>
    %207 = arith.addf %206, %205 : vector<8x128xf32>
    %208 = arith.divf %206, %207 : vector<8x128xf32>
    %209 = math.tanh %203 : vector<8x128xf32>
    %210 = vector.extract_strided_slice %208 {offsets = [0, 0], sizes = [8, 32], strides = [1, 1]} : vector<8x128xf32> to vector<8x32xf32>
    %211 = vector.extract_strided_slice %208 {offsets = [0, 32], sizes = [8, 32], strides = [1, 1]} : vector<8x128xf32> to vector<8x32xf32>
    %212 = vector.extract_strided_slice %209 {offsets = [0, 64], sizes = [8, 32], strides = [1, 1]} : vector<8x128xf32> to vector<8x32xf32>
    %213 = vector.extract_strided_slice %208 {offsets = [0, 96], sizes = [8, 32], strides = [1, 1]} : vector<8x128xf32> to vector<8x32xf32>
    %214 = arith.mulf %211, %179 : vector<8x32xf32>
    %215 = arith.mulf %210, %212 : vector<8x32xf32>
    %216 = arith.addf %214, %215 : vector<8x32xf32>
    %217 = math.tanh %216 : vector<8x32xf32>
    %218 = arith.mulf %213, %217 : vector<8x32xf32>
    %cst_39 = arith.constant dense<0.000000e+00> : vector<8x128xf32>
    %219 = tpu.matmul %218, %8, %cst_39 {dimension_numbers = #tpu.dot_dimension_numbers<[1], [0], [0], [1], [0, 0, 1, 1], [], []>} : vector<8x32xf32>, vector<32x128xf32>, vector<8x128xf32> -> vector<8x128xf32>
    %cst_40 = arith.constant dense<0.000000e+00> : vector<8x128xf32>
    %220 = tpu.matmul %200, %7, %cst_40 {dimension_numbers = #tpu.dot_dimension_numbers<[1], [0], [0], [1], [0, 0, 1, 1], [], []>} : vector<8x32xf32>, vector<32x128xf32>, vector<8x128xf32> -> vector<8x128xf32>
    %221 = arith.addf %219, %220 : vector<8x128xf32>
    %222 = arith.addf %221, %11 : vector<8x128xf32>
    %223 = arith.negf %222 : vector<8x128xf32>
    %224 = math.exp %223 : vector<8x128xf32>
    %cst_41 = arith.constant 1.000000e+00 : f32
    %225 = vector.broadcast %cst_41 : f32 to vector<8x128xf32>
    %226 = arith.addf %225, %224 : vector<8x128xf32>
    %227 = arith.divf %225, %226 : vector<8x128xf32>
    %228 = math.tanh %222 : vector<8x128xf32>
    %229 = vector.extract_strided_slice %227 {offsets = [0, 0], sizes = [8, 32], strides = [1, 1]} : vector<8x128xf32> to vector<8x32xf32>
    %230 = vector.extract_strided_slice %227 {offsets = [0, 32], sizes = [8, 32], strides = [1, 1]} : vector<8x128xf32> to vector<8x32xf32>
    %231 = vector.extract_strided_slice %228 {offsets = [0, 64], sizes = [8, 32], strides = [1, 1]} : vector<8x128xf32> to vector<8x32xf32>
    %232 = vector.extract_strided_slice %227 {offsets = [0, 96], sizes = [8, 32], strides = [1, 1]} : vector<8x128xf32> to vector<8x32xf32>
    %233 = arith.mulf %230, %198 : vector<8x32xf32>
    %234 = arith.mulf %229, %231 : vector<8x32xf32>
    %235 = arith.addf %233, %234 : vector<8x32xf32>
    %236 = math.tanh %235 : vector<8x32xf32>
    %237 = arith.mulf %232, %236 : vector<8x32xf32>
    %238 = vector.extract_strided_slice %5 {offsets = [48, 0], sizes = [8, 128], strides = [1, 1]} : vector<64x128xf32> to vector<8x128xf32>
    %cst_42 = arith.constant dense<0.000000e+00> : vector<8x128xf32>
    %239 = tpu.matmul %218, %6, %cst_42 {dimension_numbers = #tpu.dot_dimension_numbers<[1], [0], [0], [1], [0, 0, 1, 1], [], []>} : vector<8x32xf32>, vector<32x128xf32>, vector<8x128xf32> -> vector<8x128xf32>
    %240 = arith.addf %238, %239 : vector<8x128xf32>
    %241 = arith.negf %240 : vector<8x128xf32>
    %242 = math.exp %241 : vector<8x128xf32>
    %cst_43 = arith.constant 1.000000e+00 : f32
    %243 = vector.broadcast %cst_43 : f32 to vector<8x128xf32>
    %244 = arith.addf %243, %242 : vector<8x128xf32>
    %245 = arith.divf %243, %244 : vector<8x128xf32>
    %246 = math.tanh %240 : vector<8x128xf32>
    %247 = vector.extract_strided_slice %245 {offsets = [0, 0], sizes = [8, 32], strides = [1, 1]} : vector<8x128xf32> to vector<8x32xf32>
    %248 = vector.extract_strided_slice %245 {offsets = [0, 32], sizes = [8, 32], strides = [1, 1]} : vector<8x128xf32> to vector<8x32xf32>
    %249 = vector.extract_strided_slice %246 {offsets = [0, 64], sizes = [8, 32], strides = [1, 1]} : vector<8x128xf32> to vector<8x32xf32>
    %250 = vector.extract_strided_slice %245 {offsets = [0, 96], sizes = [8, 32], strides = [1, 1]} : vector<8x128xf32> to vector<8x32xf32>
    %251 = arith.mulf %248, %216 : vector<8x32xf32>
    %252 = arith.mulf %247, %249 : vector<8x32xf32>
    %253 = arith.addf %251, %252 : vector<8x32xf32>
    %254 = math.tanh %253 : vector<8x32xf32>
    %255 = arith.mulf %250, %254 : vector<8x32xf32>
    %cst_44 = arith.constant dense<0.000000e+00> : vector<8x128xf32>
    %256 = tpu.matmul %255, %8, %cst_44 {dimension_numbers = #tpu.dot_dimension_numbers<[1], [0], [0], [1], [0, 0, 1, 1], [], []>} : vector<8x32xf32>, vector<32x128xf32>, vector<8x128xf32> -> vector<8x128xf32>
    %cst_45 = arith.constant dense<0.000000e+00> : vector<8x128xf32>
    %257 = tpu.matmul %237, %7, %cst_45 {dimension_numbers = #tpu.dot_dimension_numbers<[1], [0], [0], [1], [0, 0, 1, 1], [], []>} : vector<8x32xf32>, vector<32x128xf32>, vector<8x128xf32> -> vector<8x128xf32>
    %258 = arith.addf %256, %257 : vector<8x128xf32>
    %259 = arith.addf %258, %11 : vector<8x128xf32>
    %260 = arith.negf %259 : vector<8x128xf32>
    %261 = math.exp %260 : vector<8x128xf32>
    %cst_46 = arith.constant 1.000000e+00 : f32
    %262 = vector.broadcast %cst_46 : f32 to vector<8x128xf32>
    %263 = arith.addf %262, %261 : vector<8x128xf32>
    %264 = arith.divf %262, %263 : vector<8x128xf32>
    %265 = math.tanh %259 : vector<8x128xf32>
    %266 = vector.extract_strided_slice %264 {offsets = [0, 0], sizes = [8, 32], strides = [1, 1]} : vector<8x128xf32> to vector<8x32xf32>
    %267 = vector.extract_strided_slice %264 {offsets = [0, 32], sizes = [8, 32], strides = [1, 1]} : vector<8x128xf32> to vector<8x32xf32>
    %268 = vector.extract_strided_slice %265 {offsets = [0, 64], sizes = [8, 32], strides = [1, 1]} : vector<8x128xf32> to vector<8x32xf32>
    %269 = vector.extract_strided_slice %264 {offsets = [0, 96], sizes = [8, 32], strides = [1, 1]} : vector<8x128xf32> to vector<8x32xf32>
    %270 = arith.mulf %267, %235 : vector<8x32xf32>
    %271 = arith.mulf %266, %268 : vector<8x32xf32>
    %272 = arith.addf %270, %271 : vector<8x32xf32>
    %273 = math.tanh %272 : vector<8x32xf32>
    %274 = arith.mulf %269, %273 : vector<8x32xf32>
    %275 = vector.extract_strided_slice %5 {offsets = [56, 0], sizes = [8, 128], strides = [1, 1]} : vector<64x128xf32> to vector<8x128xf32>
    %cst_47 = arith.constant dense<0.000000e+00> : vector<8x128xf32>
    %276 = tpu.matmul %255, %6, %cst_47 {dimension_numbers = #tpu.dot_dimension_numbers<[1], [0], [0], [1], [0, 0, 1, 1], [], []>} : vector<8x32xf32>, vector<32x128xf32>, vector<8x128xf32> -> vector<8x128xf32>
    %277 = arith.addf %275, %276 : vector<8x128xf32>
    %278 = arith.negf %277 : vector<8x128xf32>
    %279 = math.exp %278 : vector<8x128xf32>
    %cst_48 = arith.constant 1.000000e+00 : f32
    %280 = vector.broadcast %cst_48 : f32 to vector<8x128xf32>
    %281 = arith.addf %280, %279 : vector<8x128xf32>
    %282 = arith.divf %280, %281 : vector<8x128xf32>
    %283 = math.tanh %277 : vector<8x128xf32>
    %284 = vector.extract_strided_slice %282 {offsets = [0, 0], sizes = [8, 32], strides = [1, 1]} : vector<8x128xf32> to vector<8x32xf32>
    %285 = vector.extract_strided_slice %282 {offsets = [0, 32], sizes = [8, 32], strides = [1, 1]} : vector<8x128xf32> to vector<8x32xf32>
    %286 = vector.extract_strided_slice %283 {offsets = [0, 64], sizes = [8, 32], strides = [1, 1]} : vector<8x128xf32> to vector<8x32xf32>
    %287 = vector.extract_strided_slice %282 {offsets = [0, 96], sizes = [8, 32], strides = [1, 1]} : vector<8x128xf32> to vector<8x32xf32>
    %288 = arith.mulf %285, %253 : vector<8x32xf32>
    %289 = arith.mulf %284, %286 : vector<8x32xf32>
    %290 = arith.addf %288, %289 : vector<8x32xf32>
    %291 = math.tanh %290 : vector<8x32xf32>
    %292 = arith.mulf %287, %291 : vector<8x32xf32>
    %cst_49 = arith.constant dense<0.000000e+00> : vector<8x128xf32>
    %293 = tpu.matmul %292, %8, %cst_49 {dimension_numbers = #tpu.dot_dimension_numbers<[1], [0], [0], [1], [0, 0, 1, 1], [], []>} : vector<8x32xf32>, vector<32x128xf32>, vector<8x128xf32> -> vector<8x128xf32>
    %cst_50 = arith.constant dense<0.000000e+00> : vector<8x128xf32>
    %294 = tpu.matmul %274, %7, %cst_50 {dimension_numbers = #tpu.dot_dimension_numbers<[1], [0], [0], [1], [0, 0, 1, 1], [], []>} : vector<8x32xf32>, vector<32x128xf32>, vector<8x128xf32> -> vector<8x128xf32>
    %295 = arith.addf %293, %294 : vector<8x128xf32>
    %296 = arith.addf %295, %11 : vector<8x128xf32>
    %297 = arith.negf %296 : vector<8x128xf32>
    %298 = math.exp %297 : vector<8x128xf32>
    %cst_51 = arith.constant 1.000000e+00 : f32
    %299 = vector.broadcast %cst_51 : f32 to vector<8x128xf32>
    %300 = arith.addf %299, %298 : vector<8x128xf32>
    %301 = arith.divf %299, %300 : vector<8x128xf32>
    %302 = math.tanh %296 : vector<8x128xf32>
    %303 = vector.extract_strided_slice %301 {offsets = [0, 0], sizes = [8, 32], strides = [1, 1]} : vector<8x128xf32> to vector<8x32xf32>
    %304 = vector.extract_strided_slice %301 {offsets = [0, 32], sizes = [8, 32], strides = [1, 1]} : vector<8x128xf32> to vector<8x32xf32>
    %305 = vector.extract_strided_slice %302 {offsets = [0, 64], sizes = [8, 32], strides = [1, 1]} : vector<8x128xf32> to vector<8x32xf32>
    %306 = vector.extract_strided_slice %301 {offsets = [0, 96], sizes = [8, 32], strides = [1, 1]} : vector<8x128xf32> to vector<8x32xf32>
    %307 = arith.mulf %304, %272 : vector<8x32xf32>
    %308 = arith.mulf %303, %305 : vector<8x32xf32>
    %309 = arith.addf %307, %308 : vector<8x32xf32>
    %310 = math.tanh %309 : vector<8x32xf32>
    %311 = arith.mulf %306, %310 : vector<8x32xf32>
    %c104 = arith.constant 104 : index
    %c0_52 = arith.constant 0 : index
    %312 = vector.load %arg1[%c104, %c0_52] : memref<144x128xf32, #tpu.memory_space<vmem>>, vector<32x128xf32>
    %c138 = arith.constant 138 : index
    %c0_53 = arith.constant 0 : index
    %313 = vector.load %arg1[%c138, %c0_53] : memref<144x128xf32, #tpu.memory_space<vmem>>, vector<1x128xf32>
    %cst_54 = arith.constant dense<0.000000e+00> : vector<8x128xf32>
    %314 = tpu.matmul %311, %312, %cst_54 {dimension_numbers = #tpu.dot_dimension_numbers<[1], [0], [0], [1], [0, 0, 1, 1], [], []>} : vector<8x32xf32>, vector<32x128xf32>, vector<8x128xf32> -> vector<8x128xf32>
    %315 = vector.broadcast %313 : vector<1x128xf32> to vector<8x128xf32>
    %316 = arith.addf %314, %315 : vector<8x128xf32>
    %c0_55 = arith.constant 0 : index
    %c0_56 = arith.constant 0 : index
    %317 = vector.load %arg2[%c0_55, %c0_56] : memref<8x128xf32, #tpu.memory_space<vmem>>, vector<8x128xf32>
    tpu.vector_store %arg2[%c0_55, %c0_56], %316 {strides = array<i32>} : memref<8x128xf32, #tpu.memory_space<vmem>>, vector<8x128xf32>,
    return
  }
}

</mosaic_0001>

<bundles_post_ra>
// kernel: basic_lstm_forward.1
= control target key start
LH: loop header
LB: loop body
LE: loop exit
PB: predicated region body
PF: predicated region fallthrough
CT: control target
= control target key end

     0   :  { %7 = vsyncpa [#allocation3], 0  ;;  %s3219_s9 = smov [#allocation2]   ;;  %s3630_s0 = inlined_call_operand.vmem [shape: f32[64,8], index: 0, kind: input, shape index: {}]   ;;  %s3631_s1 = inlined_call_operand.hbm [shape: f32[144,128], index: 1, kind: input, shape index: {}]   ;;  %s3632_s2 = inlined_call_operand.vmem [shape: f32[8,128], index: 2, kind: output, shape index: {}]  }
   0x1   :  { %s15_s10 = sshll.u32 %s3219_s9, 4  ;;  %s3195_s13 = scalar_lea.hbm %s3631_s1, 2304  ;;  %s16_s10 = int_to_ptr.vmem [resolvable:$true] %s15_s10 }
   0x2   :  { %p3196_p0 = scmp.ne.s32.totalorder %s3631_s1, %s3195_s13  ;;  %p3199_p1 = scmp.lt.u32.totalorder %s3195_s13, %s3631_s1 }
   0x4   :  { %p3201_p2 = pnand %p3199_p1, %p3196_p0 }
   0x6   :  { %3204 = shalt.err (!%p3201_p2)
}
   0x7   :  { %s3205_s18 = scalar_lea.vmem %s16_s10, 2304  ;;  %p3210_p4 = scmp.lt.s32.totalorder %s16_s10, %s16_s10 }
   0x8   :  { %p3206_p3 = scmp.ne.s32.totalorder %s16_s10, %s3205_s18  ;;  %p3211_p5 = scmp.lt.s32.totalorder %s3205_s18, %s3205_s18 }
   0xa   :  { %p3212_p6 = por %p3211_p5, %p3210_p4 }
   0xc   :  { %p3213_p7 = pnand %p3212_p6, %p3206_p3 }
   0xe   :  { %3216 = shalt.err (!%p3213_p7)
}
   0xf   :  { %s3220_s19 = smov 128   ;;  %s3221_s20 = smov 8  }
  0x10   :  { %21 = dma.hbm_to_vmem [thread:$0]  %s3631_s1, 2304, %s16_s10, [#allocation3], %s3220_s19, %s3220_s19, %s3221_s20  }
  0x11   :  { %3217 = dma.done.wait [#allocation3], 2304  }
  0x12   :  { %3218 = vsyncadd [#allocation3], 4294964992  ;;  %v3222_v0 = vmov 0.0|0.0   ;;  %vm3223_vm0 = vmmov 0   ;;  %v3224_v1 = vmov 0.0   ;;  %vm39_vm1 = vcmask 64512  }
  0x13   :  { %2908 = vmatprep.subr.bf16.mxu1 %v3222_v0  ;;  %2641 = vmatprep.mubr.msk.f32.mxu1 %vm3223_vm0, %v3224_v1  ;;  %v169_v2 = vld [vmem:[#allocation2 + $0x8] sm:$0xff]  ;;  %v170_v3 = vld [vmem:[#allocation2 + $0x10] sm:$0xff]  ;;  %v33_v4 = vld [vmem:[#allocation2] sm:$0xff]  ;;  %s3225_s26 = smov 64   ;;  %s3226_s27 = smov 32   ;;  %vm186_vm2 = vcmask 261120  }
  0x14   :  { %v3257_v5 = vpack.c.bf16 %v170_v3, %v169_v2  ;;  %2619 = vmatprep.subr.mxu0 %v33_v4  ;;  %v25_v6 = vld [vmem:[%s3630_s0] sm:$0xff]  ;;  %v26_v7 = vld [vmem:[%s3630_s0 + $0x8] sm:$0xff]  ;;  %v171_v8 = vld [vmem:[#allocation2 + $0x18] sm:$0xff] }
  0x15   :  { %2620 = vmatpush3.msra.mxu0 %v33_v4  ;;  %2621 = vmatprep.mubr.msk.f32.mxu0 %vm39_vm1, %v25_v6  ;;  %v172_v9 = vld [vmem:[#allocation2 + $0x20] sm:$0xff]  ;;  %v3279_v12 = vld [vmem:[#allocation2 + $0x88] ss:$0 sm:$0xff]  ;;  %v178_v29 = vld [vmem:[#allocation2 + $0x30] sm:$0xff] }
  0x16   :  { %2910 = vmatpush3.bf16.msra.mxu1 %v3257_v5  ;;  %2622 = vmatmul.mubr.msk.f32.vlgmr.msra.gmra.mrb[0].mxu0 %vm39_vm1, %v26_v7  ;;  %v3268_v10 = vpack.c.bf16 %v172_v9, %v171_v8  ;;  %v177_v28 = vld [vmem:[#allocation2 + $0x28] sm:$0xff]  ;;  %v174_v32 = vld [vmem:[#allocation2 + $0x50] sm:$0xff]  ;;  %v28_v34 = vld [vmem:[%s3630_s0 + $0x18] sm:$0xff] }
  0x17   :  { %2911 = vmatprep.subr.bf16.mxu1 %v3222_v0  ;;  %2920 = vmatprep.subr.bf16.mxu0 %v3222_v0  ;;  %v173_v30 = vld [vmem:[#allocation2 + $0x48] sm:$0xff]  ;;  %v3287_v31 = vpack.c.bf16 %v178_v29, %v177_v28  ;;  %v27_v33 = vld [vmem:[%s3630_s0 + $0x10] sm:$0xff]  ;;  %v175_v36 = vld [vmem:[#allocation2 + $0x58] sm:$0xff] }
  0x18   :  { %v3295_v35 = vpack.c.bf16 %v174_v32, %v173_v30  ;;  %2624 = vmatprep.mubr.msk.f32.mxu0 %vm39_vm1, %v27_v33  ;;  %v176_v37 = vld [vmem:[#allocation2 + $0x60] sm:$0xff]  ;;  %v179_v39 = vld [vmem:[#allocation2 + $0x38] sm:$0xff]  ;;  %v30_v43 = vld [vmem:[%s3630_s0 + $0x28] sm:$0xff] }
  0x19   :  { %v29_v38 = vld [vmem:[%s3630_s0 + $0x20] sm:$0xff]  ;;  %2922 = vmatpush3.bf16.msra.mxu0 %v3287_v31  ;;  %v3304_v41 = vpack.c.bf16 %v176_v37, %v175_v36  ;;  %v31_v44 = vld [vmem:[%s3630_s0 + $0x30] sm:$0xff]  ;;  %v32_v45 = vld [vmem:[%s3630_s0 + $0x38] sm:$0xff] }
  0x1a   :  { %2913 = vmatpush3.bf16.msra.mxu1 %v3268_v10  ;;  %v180_v40 = vld [vmem:[#allocation2 + $0x40] sm:$0xff]  ;;  %2625 = vmatmul.mubr.msk.f32.gmra.mrb[2].mxu0 %vm39_vm1, %v28_v34  ;;  %v3366_v59 = vld [vmem:[#allocation2 + $0x89] ss:$0 sm:$0xff] }
  0x1b   :  { %2914 = vmatprep.subr.bf16.mxu1 %v3222_v0  ;;  %v3306_v42 = vpack.c.bf16 %v180_v40, %v179_v39  ;;  %2627 = vmatprep.mubr.msk.f32.mxu0 %vm39_vm1, %v29_v38 }
  0x1c   :  { %2923 = vmatprep.subr.bf16.mxu0 %v3222_v0 }
  0x1d   :  { %2642 = vmatmul.mubr.f32.vlgmr.msra.gmra.mrb[0].mxu1 %v3224_v1  ;;  %2925 = vmatpush3.bf16.msra.mxu0 %v3306_v42 }
  0x1e   :  { %2652 = vmatprep.mubr.msk.f32.mxu1 %vm3223_vm0, %v3224_v1  ;;  %2916 = vmatpush3.bf16.msra.mxu1 %v3295_v35 }
  0x1f   :  { %2917 = vmatprep.subr.bf16.mxu1 %v3222_v0  ;;  %2628 = vmatmul.mubr.msk.f32.gmra.mrb[4].mxu0 %vm39_vm1, %v30_v43 }
  0x20   :  { %2630 = vmatprep.mubr.msk.f32.mxu0 %vm39_vm1, %v31_v44  ;;  %2932 = vmatprep.subr.bf16.mxu0 %v3222_v0 }
  0x22   :  { %2919 = vmatpush3.bf16.msra.mxu1 %v3304_v41 }
  0x23   :  { %2926 = vmatprep.subr.bf16.mxu1 %v3222_v0  ;;  %2631 = vmatmul.mubr.msk.f32.gmra.mrb[6].mxu0 %vm39_vm1, %v32_v45 }
  0x24   :  { %2663 = vmatprep.mubr.msk.f32.mxu0 %vm3223_vm0, %v3224_v1 }
  0x25   :  { %2653 = vmatmul.mubr.f32.vlgmr.msra.gmra.mrb[2].mxu1 %v3224_v1 }
  0x26   :  { %2928 = vmatpush3.bf16.msra.mxu1 %v3257_v5  ;;  %2674 = vmatprep.mubr.msk.f32.mxu1 %vm3223_vm0, %v3224_v1 }
  0x27   :  { %2929 = vmatprep.subr.bf16.mxu1 %v3222_v0 }
  0x2a   :  { %2931 = vmatpush3.bf16.msra.mxu1 %v3268_v10 }
  0x2b   :  { %2938 = vmatprep.subr.bf16.mxu1 %v3222_v0 }
  0xe9   :  { %v3277_v11 = vpop.f32.mrb[0].mxu0 }
  0xea   :  { %v130_v13 = vpop.f32.mrb[1].mxu0  ;;  %v136_v58 = vadd.f32 %v3277_v11, %v3279_v12 }
  0xeb   :  { %v131_v14 = vadd.f32 %v3279_v12, %v130_v13 }
  0xed   :  { %v3338_v49 = vpop.f32.mrb[2].mxu0 }
  0xee   :  { %v3340_v50 = vpop.f32.mrb[3].mxu0 }
  0xf0   :  { %v256_v15 = vpop.f32.mrb[0].mxu1 }
  0xf1   :  { %v260_v16 = vadd.f32 %v256_v15, %v131_v14  ;;  %v2643_v17 = vpop.f32.mrb[1].mxu1 }
  0xf2   :  { %v3342_v51 = vpop.f32.mrb[4].mxu0 }
  0xf3   :  { %3066 = vtanh.f32 %v260_v16  ;;  %v2445_v19 = vmul.f32 -1.442695, %v260_v16  ;;  %v3344_v52 = vpop.f32.mrb[5].mxu0 }
  0xf5   :  { %3068 = vpow2.f32 %v2445_v19 }
  0xf6   :  { %v3346_v54 = vpop.f32.mrb[6].mxu0 }
  0xf7   :  { %v3348_v56 = vpop.f32.mrb[7].mxu0 }
  0xf8   :  { %v351_v53 = vpop.f32.mrb[2].mxu1 }
  0xf9   :  { %v2654_v55 = vpop.f32.mrb[3].mxu1 }
  0xfd   :  { %v3067_v18 = vpop.eup %3066 }
  0xfe   :  { %270 = vrot.lane.b32.xlu0 %v3067_v18, %s3225_s26 }
  0xff   :  { %v3069_v20 = vpop.eup %3068 }
 0x100   :  { %v264_v21 = vadd.f32 1.0, %v3069_v20 }
 0x102   :  { %3070 = vrcp.f32 %v264_v21 }
 0x10c   :  { %v3071_v22 = vpop.eup %3070 }
 0x10d   :  { %v268_v25 = vmul.f32 0.0, %v3071_v22 }
 0x170   :  { %v271_v23 = vpop.permute.xlu0 %270 }
 0x171   :  { %v273_v24 = vmul.f32 %v3071_v22, %v271_v23 }
 0x173   :  { %275 = vrot.lane.b32.xlu0 %v273_v24, %s3226_s27 }
 0x1e5   :  { %v276_v26 = vpop.permute.xlu0 %275 }
 0x1e6   :  { %v3284_v27 = vadd.f32 %v276_v26, %v268_v25 }
 0x1e8   :  { %3072 = vtanh.f32 %v3284_v27 }
 0x1f2   :  { %v3073_v46 = vpop.eup %3072 }
 0x1f3   :  { %281 = vrot.lane.b32.xlu1 %v3073_v46, %s3225_s26  ;;  %v141_v46 = vadd.f32 %v3279_v12, %v3340_v50 }
 0x265   :  { %v282_v47 = vpop.permute.xlu1 %281 }
 0x266   :  { %v284_v48 = vmul.f32 %v3071_v22, %v282_v47 }
 0x268   :  { %356 = vrot.lane.b32.xlu1 %v284_v48, %s3226_s27 }
 0x2da   :  { %v357_v57 = vpop.permute.xlu1 %356 }
 0x2db   :  { %2664 = vmatmul.mubr.msk.f32.vlgmr.msra.gmra.mrb[8].mxu0 %vm186_vm2, %v357_v57  ;;  %2675 = vmatmul.mubr.msk.f32.vlgmr.msra.gmra.mrb[4].mxu1 %vm186_vm2, %v357_v57 }
 0x2dc   :  { %2940 = vmatpush3.bf16.msra.mxu1 %v3287_v31  ;;  %2934 = vmatpush3.bf16.msra.mxu0 %v3295_v35 }
 0x2dd   :  { %2941 = vmatprep.subr.bf16.mxu1 %v3222_v0  ;;  %2935 = vmatprep.subr.bf16.mxu0 %v3222_v0 }
 0x2de   :  { %2696 = vmatprep.mubr.msk.f32.mxu1 %vm3223_vm0, %v3224_v1  ;;  %2685 = vmatprep.mubr.msk.f32.mxu0 %vm3223_vm0, %v3224_v1 }
 0x2e0   :  { %2943 = vmatpush3.bf16.msra.mxu1 %v3306_v42  ;;  %2937 = vmatpush3.bf16.msra.mxu0 %v3304_v41 }
 0x2e1   :  { %2944 = vmatprep.subr.bf16.mxu0 %v3222_v0  ;;  %2950 = vmatprep.subr.bf16.mxu1 %v3222_v0 }
 0x3ae   :  { %v426_v60 = vpop.f32.mrb[8].mxu0  ;;  %v521_v61 = vpop.f32.mrb[4].mxu1 }
 0x3af   :  { %v427_v62 = vadd.f32 %v426_v60, %v351_v53  ;;  %v525_v63 = vadd.f32 %v521_v61, %v136_v58  ;;  %v2665_v2 = vpop.f32.mrb[9].mxu0  ;;  %v2676_v3 = vpop.f32.mrb[5].mxu1 }
 0x3b1   :  { %v430_v4 = vadd.f32 %v3366_v59, %v427_v62  ;;  %3074 = vtanh.f32 %v525_v63  ;;  %v2449_v8 = vmul.f32 -1.442695, %v525_v63 }
 0x3b3   :  { %3076 = vtanh.f32 %v430_v4  ;;  %v2447_v9 = vmul.f32 -1.442695, %v430_v4 }
 0x3b4   :  { %3078 = vpow2.f32 %v2449_v8 }
 0x3b5   :  { %3080 = vpow2.f32 %v2447_v9 }
 0x3bb   :  { %v3075_v6 = vpop.eup %3074 }
 0x3bc   :  { %535 = vrot.lane.b32.xlu1 %v3075_v6, %s3225_s26 }
 0x3bd   :  { %v3077_v7 = vpop.eup %3076 }
 0x3be   :  { %440 = vrot.lane.b32.xlu0 %v3077_v7, %s3225_s26  ;;  %v3079_v11 = vpop.eup %3078 }
 0x3bf   :  { %v3081_v13 = vpop.eup %3080  ;;  %v529_v14 = vadd.f32 1.0, %v3079_v11 }
 0x3c0   :  { %v434_v15 = vadd.f32 1.0, %v3081_v13 }
 0x3c1   :  { %3082 = vrcp.f32 %v529_v14 }
 0x3c2   :  { %3084 = vrcp.f32 %v434_v15 }
 0x3cb   :  { %v3083_v16 = vpop.eup %3082 }
 0x3cc   :  { %v3085_v19 = vpop.eup %3084  ;;  %v533_v22 = vmul.f32 %v3083_v16, %v3284_v27 }
 0x3cd   :  { %v438_v25 = vmul.f32 0.0, %v3085_v19 }
 0x42e   :  { %v536_v17 = vpop.permute.xlu1 %535 }
 0x42f   :  { %v538_v18 = vmul.f32 %v3083_v16, %v536_v17 }
 0x430   :  { %v441_v20 = vpop.permute.xlu0 %440 }
 0x431   :  { %v443_v21 = vmul.f32 %v3085_v19, %v441_v20  ;;  %540 = vrot.lane.b32.xlu1 %v538_v18, %s3226_s27 }
 0x433   :  { %445 = vrot.lane.b32.xlu0 %v443_v21, %s3226_s27 }
 0x4a3   :  { %v541_v23 = vpop.permute.xlu1 %540 }
 0x4a4   :  { %v3374_v24 = vadd.f32 %v541_v23, %v533_v22 }
 0x4a5   :  { %v446_v26 = vpop.permute.xlu0 %445 }
 0x4a6   :  { %3086 = vtanh.f32 %v3374_v24  ;;  %v3377_v28 = vadd.f32 %v446_v26, %v438_v25 }
 0x4a8   :  { %3088 = vtanh.f32 %v3377_v28 }
 0x4b0   :  { %v3087_v29 = vpop.eup %3086 }
 0x4b1   :  { %546 = vrot.lane.b32.xlu1 %v3087_v29, %s3225_s26  ;;  %v146_v29 = vadd.f32 %v3338_v49, %v3279_v12 }
 0x4b2   :  { %v3089_v30 = vpop.eup %3088 }
 0x4b3   :  { %451 = vrot.lane.b32.xlu0 %v3089_v30, %s3225_s26 }
 0x523   :  { %v547_v32 = vpop.permute.xlu1 %546 }
 0x524   :  { %v549_v33 = vmul.f32 %v3083_v16, %v547_v32 }
 0x525   :  { %v452_v27 = vpop.permute.xlu0 %451 }
 0x526   :  { %v454_v34 = vmul.f32 %v3085_v19, %v452_v27  ;;  %626 = vrot.lane.b32.xlu1 %v549_v33, %s3226_s27 }
 0x528   :  { %551 = vrot.lane.b32.xlu0 %v454_v34, %s3226_s27 }
 0x598   :  { %v627_v36 = vpop.permute.xlu1 %626 }
 0x599   :  { %2697 = vmatmul.mubr.msk.f32.vlgmr.msra.gmra.mrb[6].mxu1 %vm186_vm2, %v627_v36 }
 0x59a   :  { %v552_v37 = vpop.permute.xlu0 %551  ;;  %2952 = vmatpush3.bf16.msra.mxu1 %v3295_v35  ;;  %2718 = vmatprep.mubr.msk.f32.mxu1 %vm3223_vm0, %v3224_v1 }
 0x59b   :  { %2686 = vmatmul.mubr.msk.f32.vlgmr.msra.gmra.mrb[10].mxu0 %vm186_vm2, %v552_v37  ;;  %2953 = vmatprep.subr.bf16.mxu1 %v3222_v0 }
 0x59c   :  { %2946 = vmatpush3.bf16.msra.mxu0 %v3257_v5  ;;  %2707 = vmatprep.mubr.msk.f32.mxu0 %vm3223_vm0, %v3224_v1 }
 0x59d   :  { %2947 = vmatprep.subr.bf16.mxu0 %v3222_v0 }
 0x59e   :  { %2955 = vmatpush3.bf16.msra.mxu1 %v3304_v41 }
 0x59f   :  { %2962 = vmatprep.subr.bf16.mxu1 %v3222_v0 }
 0x5a0   :  { %2949 = vmatpush3.bf16.msra.mxu0 %v3268_v10 }
 0x5a1   :  { %2956 = vmatprep.subr.bf16.mxu0 %v3222_v0 }
 0x5a3   :  { %2708 = vmatmul.mubr.msk.f32.vlgmr.msra.gmra.mrb[12].mxu0 %vm186_vm2, %v627_v36 }
 0x5a4   :  { %2958 = vmatpush3.bf16.msra.mxu0 %v3287_v31  ;;  %2729 = vmatprep.mubr.msk.f32.mxu0 %vm3223_vm0, %v3224_v1 }
 0x5a5   :  { %2959 = vmatprep.subr.bf16.mxu0 %v3222_v0 }
 0x5a8   :  { %2961 = vmatpush3.bf16.msra.mxu0 %v3306_v42 }
 0x5a9   :  { %2968 = vmatprep.subr.bf16.mxu0 %v3222_v0 }
 0x66c   :  { %v696_v38 = vpop.f32.mrb[6].mxu1 }
 0x66d   :  { %v2698_v39 = vpop.f32.mrb[7].mxu1 }
 0x66e   :  { %v621_v40 = vpop.f32.mrb[10].mxu0 }
 0x66f   :  { %v697_v43 = vadd.f32 %v696_v38, %v621_v40  ;;  %v2687_v44 = vpop.f32.mrb[11].mxu0 }
 0x671   :  { %v700_v45 = vadd.f32 %v3366_v59, %v697_v43 }
 0x673   :  { %3090 = vtanh.f32 %v700_v45  ;;  %v2452_v58 = vmul.f32 -1.442695, %v700_v45 }
 0x676   :  { %v791_v47 = vpop.f32.mrb[12].mxu0 }
 0x677   :  { %v795_v48 = vadd.f32 %v791_v47, %v141_v46  ;;  %v2709_v53 = vpop.f32.mrb[13].mxu0 }
 0x679   :  { %3092 = vtanh.f32 %v795_v48  ;;  %v2454_v60 = vmul.f32 -1.442695, %v795_v48 }
 0x67a   :  { %3094 = vpow2.f32 %v2452_v58 }
 0x67b   :  { %3096 = vpow2.f32 %v2454_v60 }
 0x67d   :  { %v3091_v55 = vpop.eup %3090 }
 0x67e   :  { %710 = vrot.lane.b32.xlu0 %v3091_v55, %s3225_s26 }
 0x683   :  { %v3093_v57 = vpop.eup %3092 }
 0x684   :  { %805 = vrot.lane.b32.xlu1 %v3093_v57, %s3225_s26  ;;  %v3095_v61 = vpop.eup %3094 }
 0x685   :  { %v704_v62 = vadd.f32 1.0, %v3095_v61  ;;  %v3097_v63 = vpop.eup %3096 }
 0x686   :  { %v799_v2 = vadd.f32 1.0, %v3097_v63 }
 0x687   :  { %3098 = vrcp.f32 %v704_v62 }
 0x688   :  { %3100 = vrcp.f32 %v799_v2 }
 0x691   :  { %v3099_v50 = vpop.eup %3098 }
 0x692   :  { %v3101_v6 = vpop.eup %3100  ;;  %v708_v9 = vmul.f32 %v3099_v50, %v3377_v28 }
 0x693   :  { %v803_v14 = vmul.f32 %v3101_v6, %v3374_v24 }
 0x6f0   :  { %v711_v3 = vpop.permute.xlu0 %710 }
 0x6f1   :  { %v713_v4 = vmul.f32 %v3099_v50, %v711_v3 }
 0x6f3   :  { %715 = vrot.lane.b32.xlu0 %v713_v4, %s3226_s27 }
 0x6f6   :  { %v806_v7 = vpop.permute.xlu1 %805 }
 0x6f7   :  { %v808_v8 = vmul.f32 %v3101_v6, %v806_v7 }
 0x6f9   :  { %810 = vrot.lane.b32.xlu1 %v808_v8, %s3226_s27 }
 0x765   :  { %v716_v11 = vpop.permute.xlu0 %715 }
 0x766   :  { %v3413_v13 = vadd.f32 %v716_v11, %v708_v9 }
 0x768   :  { %3102 = vtanh.f32 %v3413_v13 }
 0x76b   :  { %v811_v15 = vpop.permute.xlu1 %810 }
 0x76c   :  { %v3417_v16 = vadd.f32 %v811_v15, %v803_v14 }
 0x76e   :  { %3104 = vtanh.f32 %v3417_v16 }
 0x772   :  { %v3103_v17 = vpop.eup %3102 }
 0x773   :  { %721 = vrot.lane.b32.xlu0 %v3103_v17, %s3225_s26 }
 0x778   :  { %v3105_v18 = vpop.eup %3104 }
 0x779   :  { %816 = vrot.lane.b32.xlu1 %v3105_v18, %s3225_s26 }
 0x7e5   :  { %v722_v19 = vpop.permute.xlu0 %721 }
 0x7e6   :  { %v724_v20 = vmul.f32 %v3099_v50, %v722_v19  ;;  %v151_v19 = vadd.f32 %v3279_v12, %v3344_v52 }
 0x7e8   :  { %821 = vrot.lane.b32.xlu0 %v724_v20, %s3226_s27 }
 0x7eb   :  { %v817_v21 = vpop.permute.xlu1 %816 }
 0x7ec   :  { %v819_v22 = vmul.f32 %v3101_v6, %v817_v21 }
 0x7ee   :  { %896 = vrot.lane.b32.xlu1 %v819_v22, %s3226_s27 }
 0x85a   :  { %v822_v23 = vpop.permute.xlu0 %821 }
 0x85b   :  { %2719 = vmatmul.mubr.msk.f32.vlgmr.msra.gmra.mrb[8].mxu1 %vm186_vm2, %v822_v23 }
 0x85c   :  { %2964 = vmatpush3.bf16.msra.mxu1 %v3257_v5  ;;  %2740 = vmatprep.mubr.msk.f32.mxu1 %vm3223_vm0, %v3224_v1 }
 0x85d   :  { %2965 = vmatprep.subr.bf16.mxu1 %v3222_v0 }
 0x860   :  { %2967 = vmatpush3.bf16.msra.mxu1 %v3268_v10  ;;  %v897_v24 = vpop.permute.xlu1 %896 }
 0x861   :  { %2730 = vmatmul.mubr.msk.f32.vlgmr.msra.gmra.mrb[14].mxu0 %vm186_vm2, %v897_v24  ;;  %2974 = vmatprep.subr.bf16.mxu1 %v3222_v0 }
 0x862   :  { %2970 = vmatpush3.bf16.msra.mxu0 %v3295_v35  ;;  %2751 = vmatprep.mubr.msk.f32.mxu0 %vm3223_vm0, %v3224_v1 }
 0x863   :  { %2741 = vmatmul.mubr.msk.f32.vlgmr.msra.gmra.mrb[10].mxu1 %vm186_vm2, %v897_v24  ;;  %2971 = vmatprep.subr.bf16.mxu0 %v3222_v0 }
 0x864   :  { %2976 = vmatpush3.bf16.msra.mxu1 %v3287_v31  ;;  %2762 = vmatprep.mubr.msk.f32.mxu1 %vm3223_vm0, %v3224_v1 }
 0x865   :  { %2977 = vmatprep.subr.bf16.mxu1 %v3222_v0 }
 0x866   :  { %2973 = vmatpush3.bf16.msra.mxu0 %v3304_v41 }
 0x867   :  { %2980 = vmatprep.subr.bf16.mxu0 %v3222_v0 }
 0x868   :  { %2979 = vmatpush3.bf16.msra.mxu1 %v3306_v42 }
 0x869   :  { %2986 = vmatprep.subr.bf16.mxu1 %v3222_v0 }
 0x92e   :  { %v891_v25 = vpop.f32.mrb[8].mxu1 }
 0x92f   :  { %v2720_v26 = vpop.f32.mrb[9].mxu1 }
 0x934   :  { %v966_v28 = vpop.f32.mrb[14].mxu0 }
 0x935   :  { %v967_v30 = vadd.f32 %v966_v28, %v891_v25  ;;  %v2731_v32 = vpop.f32.mrb[15].mxu0 }
 0x936   :  { %v1061_v33 = vpop.f32.mrb[10].mxu1 }
 0x937   :  { %v970_v27 = vadd.f32 %v3366_v59, %v967_v30  ;;  %v1065_v34 = vadd.f32 %v1061_v33, %v146_v29  ;;  %v2742_v36 = vpop.f32.mrb[11].mxu1 }
 0x939   :  { %3106 = vtanh.f32 %v970_v27  ;;  %v2457_v39 = vmul.f32 -1.442695, %v970_v27  ;;  %v2459_v40 = vmul.f32 -1.442695, %v1065_v34 }
 0x93a   :  { %3108 = vtanh.f32 %v1065_v34 }
 0x93b   :  { %3110 = vpow2.f32 %v2457_v39 }
 0x93c   :  { %3112 = vpow2.f32 %v2459_v40 }
 0x943   :  { %v3107_v37 = vpop.eup %3106 }
 0x944   :  { %v3109_v38 = vpop.eup %3108  ;;  %980 = vrot.lane.b32.xlu0 %v3107_v37, %s3225_s26 }
 0x945   :  { %1075 = vrot.lane.b32.xlu1 %v3109_v38, %s3225_s26  ;;  %v3111_v49 = vpop.eup %3110 }
 0x946   :  { %v3113_v43 = vpop.eup %3112  ;;  %v974_v44 = vadd.f32 1.0, %v3111_v49 }
 0x947   :  { %v1069_v45 = vadd.f32 1.0, %v3113_v43 }
 0x948   :  { %3114 = vrcp.f32 %v974_v44 }
 0x949   :  { %3116 = vrcp.f32 %v1069_v45 }
 0x952   :  { %v3115_v46 = vpop.eup %3114 }
 0x953   :  { %v3117_v48 = vpop.eup %3116  ;;  %v978_v58 = vmul.f32 %v3115_v46, %v3413_v13 }
 0x954   :  { %v1073_v60 = vmul.f32 %v3117_v48, %v3417_v16 }
 0x9b6   :  { %v981_v47 = vpop.permute.xlu0 %980 }
 0x9b7   :  { %v1076_v53 = vpop.permute.xlu1 %1075  ;;  %v983_v55 = vmul.f32 %v3115_v46, %v981_v47 }
 0x9b8   :  { %v1078_v57 = vmul.f32 %v3117_v48, %v1076_v53 }
 0x9b9   :  { %985 = vrot.lane.b32.xlu0 %v983_v55, %s3226_s27 }
 0x9ba   :  { %1080 = vrot.lane.b32.xlu1 %v1078_v57, %s3226_s27 }
 0xa2b   :  { %v986_v61 = vpop.permute.xlu0 %985 }
 0xa2c   :  { %v1081_v62 = vpop.permute.xlu1 %1080  ;;  %v3454_v63 = vadd.f32 %v986_v61, %v978_v58 }
 0xa2d   :  { %v3456_v2 = vadd.f32 %v1081_v62, %v1073_v60 }
 0xa2e   :  { %3118 = vtanh.f32 %v3454_v63 }
 0xa2f   :  { %3120 = vtanh.f32 %v3456_v2 }
 0xa38   :  { %v3119_v50 = vpop.eup %3118 }
 0xa39   :  { %v3121_v3 = vpop.eup %3120  ;;  %991 = vrot.lane.b32.xlu0 %v3119_v50, %s3225_s26  ;;  %v156_v50 = vadd.f32 %v3342_v51, %v3279_v12 }
 0xa3a   :  { %1086 = vrot.lane.b32.xlu1 %v3121_v3, %s3225_s26 }
 0xaab   :  { %v992_v4 = vpop.permute.xlu0 %991 }
 0xaac   :  { %v1087_v6 = vpop.permute.xlu1 %1086  ;;  %v994_v7 = vmul.f32 %v3115_v46, %v992_v4 }
 0xaad   :  { %v1089_v8 = vmul.f32 %v3117_v48, %v1087_v6 }
 0xaae   :  { %1091 = vrot.lane.b32.xlu0 %v994_v7, %s3226_s27 }
 0xaaf   :  { %1166 = vrot.lane.b32.xlu1 %v1089_v8, %s3226_s27 }
 0xb20   :  { %v1092_v9 = vpop.permute.xlu0 %1091 }
 0xb21   :  { %v1167_v11 = vpop.permute.xlu1 %1166  ;;  %2752 = vmatmul.mubr.msk.f32.vlgmr.msra.gmra.mrb[16].mxu0 %vm186_vm2, %v1092_v9 }
 0xb22   :  { %2763 = vmatmul.mubr.msk.f32.vlgmr.msra.gmra.mrb[12].mxu1 %vm186_vm2, %v1167_v11  ;;  %2982 = vmatpush3.bf16.msra.mxu0 %v3257_v5 }
 0xb23   :  { %2983 = vmatprep.subr.bf16.mxu0 %v3222_v0  ;;  %2773 = vmatprep.mubr.msk.f32.mxu0 %vm3223_vm0, %v3224_v1 }
 0xb24   :  { %2988 = vmatpush3.bf16.msra.mxu1 %v3295_v35  ;;  %2784 = vmatprep.mubr.msk.f32.mxu1 %vm3223_vm0, %v3224_v1 }
 0xb25   :  { %2989 = vmatprep.subr.bf16.mxu1 %v3222_v0 }
 0xb26   :  { %2985 = vmatpush3.bf16.msra.mxu0 %v3268_v10 }
 0xb27   :  { %2992 = vmatprep.subr.bf16.mxu0 %v3222_v0 }
 0xb28   :  { %2991 = vmatpush3.bf16.msra.mxu1 %v3304_v41 }
 0xb29   :  { %2774 = vmatmul.mubr.msk.f32.vlgmr.msra.gmra.mrb[18].mxu0 %vm186_vm2, %v1167_v11  ;;  %2998 = vmatprep.subr.bf16.mxu1 %v3222_v0 }
 0xb2a   :  { %2994 = vmatpush3.bf16.msra.mxu0 %v3287_v31  ;;  %2795 = vmatprep.mubr.msk.f32.mxu0 %vm3223_vm0, %v3224_v1 }
 0xb2b   :  { %2995 = vmatprep.subr.bf16.mxu0 %v3222_v0 }
 0xb2e   :  { %2997 = vmatpush3.bf16.msra.mxu0 %v3306_v42 }
 0xb2f   :  { %3004 = vmatprep.subr.bf16.mxu0 %v3222_v0 }
 0xbf4   :  { %v1161_v13 = vpop.f32.mrb[16].mxu0 }
 0xbf5   :  { %v1236_v14 = vpop.f32.mrb[12].mxu1  ;;  %v2753_v15 = vpop.f32.mrb[17].mxu0 }
 0xbf6   :  { %v1237_v16 = vadd.f32 %v1236_v14, %v1161_v13  ;;  %v2764_v17 = vpop.f32.mrb[13].mxu1 }
 0xbf8   :  { %v1240_v18 = vadd.f32 %v3366_v59, %v1237_v16 }
 0xbfa   :  { %3122 = vtanh.f32 %v1240_v18  ;;  %v2462_v25 = vmul.f32 -1.442695, %v1240_v18 }
 0xbfc   :  { %v1331_v20 = vpop.f32.mrb[18].mxu0 }
 0xbfd   :  { %v1335_v21 = vadd.f32 %v1331_v20, %v151_v19  ;;  %v2775_v22 = vpop.f32.mrb[19].mxu0 }
 0xbff   :  { %3124 = vtanh.f32 %v1335_v21  ;;  %v2464_v26 = vmul.f32 -1.442695, %v1335_v21 }
 0xc00   :  { %3126 = vpow2.f32 %v2462_v25 }
 0xc01   :  { %3128 = vpow2.f32 %v2464_v26 }
 0xc04   :  { %v3123_v23 = vpop.eup %3122 }
 0xc05   :  { %1250 = vrot.lane.b32.xlu0 %v3123_v23, %s3225_s26 }
 0xc09   :  { %v3125_v24 = vpop.eup %3124 }
 0xc0a   :  { %1345 = vrot.lane.b32.xlu1 %v3125_v24, %s3225_s26  ;;  %v3127_v28 = vpop.eup %3126 }
 0xc0b   :  { %v1244_v29 = vadd.f32 1.0, %v3127_v28  ;;  %v3129_v30 = vpop.eup %3128 }
 0xc0c   :  { %v1339_v32 = vadd.f32 1.0, %v3129_v30 }
 0xc0d   :  { %3130 = vrcp.f32 %v1244_v29 }
 0xc0e   :  { %3132 = vrcp.f32 %v1339_v32 }
 0xc17   :  { %v3131_v52 = vpop.eup %3130 }
 0xc18   :  { %v3133_v34 = vpop.eup %3132  ;;  %v1248_v38 = vmul.f32 %v3131_v52, %v3454_v63 }
 0xc19   :  { %v1343_v49 = vmul.f32 %v3133_v34, %v3456_v2 }
 0xc77   :  { %v1251_v33 = vpop.permute.xlu0 %1250 }
 0xc78   :  { %v1253_v27 = vmul.f32 %v3131_v52, %v1251_v33 }
 0xc7a   :  { %1255 = vrot.lane.b32.xlu0 %v1253_v27, %s3226_s27 }
 0xc7c   :  { %v1346_v36 = vpop.permute.xlu1 %1345 }
 0xc7d   :  { %v1348_v37 = vmul.f32 %v3133_v34, %v1346_v36 }
 0xc7f   :  { %1350 = vrot.lane.b32.xlu1 %v1348_v37, %s3226_s27 }
 0xcec   :  { %v1256_v39 = vpop.permute.xlu0 %1255 }
 0xced   :  { %v3493_v40 = vadd.f32 %v1256_v39, %v1248_v38 }
 0xcef   :  { %3134 = vtanh.f32 %v3493_v40 }
 0xcf1   :  { %v1351_v43 = vpop.permute.xlu1 %1350 }
 0xcf2   :  { %v3497_v44 = vadd.f32 %v1351_v43, %v1343_v49 }
 0xcf4   :  { %3136 = vtanh.f32 %v3497_v44 }
 0xcf9   :  { %v3135_v45 = vpop.eup %3134 }
 0xcfa   :  { %1261 = vrot.lane.b32.xlu0 %v3135_v45, %s3225_s26  ;;  %v161_v45 = vadd.f32 %v3279_v12, %v3348_v56 }
 0xcfe   :  { %v3137_v46 = vpop.eup %3136 }
 0xcff   :  { %1356 = vrot.lane.b32.xlu1 %v3137_v46, %s3225_s26 }
 0xd6c   :  { %v1262_v47 = vpop.permute.xlu0 %1261 }
 0xd6d   :  { %v1264_v48 = vmul.f32 %v3131_v52, %v1262_v47 }
 0xd6f   :  { %1361 = vrot.lane.b32.xlu0 %v1264_v48, %s3226_s27 }
 0xd71   :  { %v1357_v53 = vpop.permute.xlu1 %1356 }
 0xd72   :  { %v1359_v55 = vmul.f32 %v3133_v34, %v1357_v53 }
 0xd74   :  { %1436 = vrot.lane.b32.xlu1 %v1359_v55, %s3226_s27 }
 0xde1   :  { %v1362_v57 = vpop.permute.xlu0 %1361 }
 0xde2   :  { %2785 = vmatmul.mubr.msk.f32.vlgmr.msra.gmra.mrb[14].mxu1 %vm186_vm2, %v1362_v57 }
 0xde3   :  { %3000 = vmatpush3.bf16.msra.mxu1 %v3257_v5  ;;  %2806 = vmatprep.mubr.msk.f32.mxu1 %vm3223_vm0, %v3224_v1 }
 0xde4   :  { %3001 = vmatprep.subr.bf16.mxu1 %v3222_v0 }
 0xde6   :  { %v1437_v58 = vpop.permute.xlu1 %1436 }
 0xde7   :  { %3003 = vmatpush3.bf16.msra.mxu1 %v3268_v10  ;;  %2796 = vmatmul.mubr.msk.f32.vlgmr.msra.gmra.mrb[20].mxu0 %vm186_vm2, %v1437_v58 }
 0xde8   :  { %3006 = vmatpush3.bf16.msra.mxu0 %v3295_v35  ;;  %3010 = vmatprep.subr.bf16.mxu1 %v3222_v0 }
 0xde9   :  { %3007 = vmatprep.subr.bf16.mxu0 %v3222_v0  ;;  %2817 = vmatprep.mubr.msk.f32.mxu0 %vm3223_vm0, %v3224_v1 }
 0xdea   :  { %2807 = vmatmul.mubr.msk.f32.vlgmr.msra.gmra.mrb[16].mxu1 %vm186_vm2, %v1437_v58 }
 0xdeb   :  { %3012 = vmatpush3.bf16.msra.mxu1 %v3287_v31  ;;  %2828 = vmatprep.mubr.msk.f32.mxu1 %vm3223_vm0, %v3224_v1 }
 0xdec   :  { %3009 = vmatpush3.bf16.msra.mxu0 %v3304_v41  ;;  %3013 = vmatprep.subr.bf16.mxu1 %v3222_v0 }
 0xded   :  { %3016 = vmatprep.subr.bf16.mxu0 %v3222_v0 }
 0xdef   :  { %3015 = vmatpush3.bf16.msra.mxu1 %v3306_v42 }
 0xdf0   :  { %3022 = vmatprep.subr.bf16.mxu1 %v3222_v0 }
 0xeb5   :  { %v1431_v60 = vpop.f32.mrb[14].mxu1 }
 0xeb6   :  { %v2786_v61 = vpop.f32.mrb[15].mxu1 }
 0xeba   :  { %v1506_v62 = vpop.f32.mrb[20].mxu0 }
 0xebb   :  { %v1507_v63 = vadd.f32 %v1506_v62, %v1431_v60  ;;  %v2797_v2 = vpop.f32.mrb[21].mxu0 }
 0xebd   :  { %v1510_v3 = vadd.f32 %v3366_v59, %v1507_v63  ;;  %v1601_v4 = vpop.f32.mrb[16].mxu1 }
 0xebe   :  { %v1605_v6 = vadd.f32 %v1601_v4, %v156_v50  ;;  %v2808_v7 = vpop.f32.mrb[17].mxu1 }
 0xebf   :  { %3138 = vtanh.f32 %v1510_v3  ;;  %v2467_v11 = vmul.f32 -1.442695, %v1510_v3 }
 0xec0   :  { %3140 = vtanh.f32 %v1605_v6  ;;  %v2469_v13 = vmul.f32 -1.442695, %v1605_v6 }
 0xec1   :  { %3142 = vpow2.f32 %v2467_v11 }
 0xec2   :  { %3144 = vpow2.f32 %v2469_v13 }
 0xec9   :  { %v3139_v8 = vpop.eup %3138 }
 0xeca   :  { %v3141_v9 = vpop.eup %3140  ;;  %1520 = vrot.lane.b32.xlu0 %v3139_v8, %s3225_s26 }
 0xecb   :  { %1615 = vrot.lane.b32.xlu1 %v3141_v9, %s3225_s26  ;;  %v3143_v14 = vpop.eup %3142 }
 0xecc   :  { %v3145_v15 = vpop.eup %3144  ;;  %v1514_v51 = vadd.f32 1.0, %v3143_v14 }
 0xecd   :  { %v1609_v16 = vadd.f32 1.0, %v3145_v15 }
 0xece   :  { %3146 = vrcp.f32 %v1514_v51 }
 0xecf   :  { %3148 = vrcp.f32 %v1609_v16 }
 0xed8   :  { %v3147_v17 = vpop.eup %3146 }
 0xed9   :  { %v3149_v19 = vpop.eup %3148  ;;  %v1518_v23 = vmul.f32 %v3147_v17, %v3493_v40 }
 0xeda   :  { %v1613_v24 = vmul.f32 %v3149_v19, %v3497_v44 }
 0xf3c   :  { %v1521_v18 = vpop.permute.xlu0 %1520 }
 0xf3d   :  { %v1616_v20 = vpop.permute.xlu1 %1615  ;;  %v1523_v21 = vmul.f32 %v3147_v17, %v1521_v18 }
 0xf3e   :  { %v1618_v22 = vmul.f32 %v3149_v19, %v1616_v20 }
 0xf3f   :  { %1525 = vrot.lane.b32.xlu0 %v1523_v21, %s3226_s27 }
 0xf40   :  { %1620 = vrot.lane.b32.xlu1 %v1618_v22, %s3226_s27 }
 0xfb1   :  { %v1526_v25 = vpop.permute.xlu0 %1525 }
 0xfb2   :  { %v1621_v26 = vpop.permute.xlu1 %1620  ;;  %v3534_v28 = vadd.f32 %v1526_v25, %v1518_v23  ;;  %v3194_v23 = vld [vmem:[#allocation2 + $0x88] ss:$0 sm:$0xff] }
 0xfb3   :  { %v3536_v29 = vadd.f32 %v1621_v26, %v1613_v24  ;;  %v166_v24 = vadd.f32 %v3194_v23, %v3346_v54 }
 0xfb4   :  { %3150 = vtanh.f32 %v3534_v28 }
 0xfb5   :  { %3152 = vtanh.f32 %v3536_v29 }
 0xfbe   :  { %v3151_v30 = vpop.eup %3150 }
 0xfbf   :  { %v3153_v32 = vpop.eup %3152  ;;  %1531 = vrot.lane.b32.xlu0 %v3151_v30, %s3225_s26 }
 0xfc0   :  { %1626 = vrot.lane.b32.xlu1 %v3153_v32, %s3225_s26 }
0x1031   :  { %v1532_v52 = vpop.permute.xlu0 %1531 }
0x1032   :  { %v1627_v33 = vpop.permute.xlu1 %1626  ;;  %v1534_v27 = vmul.f32 %v3147_v17, %v1532_v52 }
0x1033   :  { %v1629_v34 = vmul.f32 %v3149_v19, %v1627_v33 }
0x1034   :  { %1631 = vrot.lane.b32.xlu0 %v1534_v27, %s3226_s27 }
0x1035   :  { %1706 = vrot.lane.b32.xlu1 %v1629_v34, %s3226_s27 }
0x10a6   :  { %v1632_v36 = vpop.permute.xlu0 %1631 }
0x10a7   :  { %v1707_v37 = vpop.permute.xlu1 %1706  ;;  %2818 = vmatmul.mubr.msk.f32.vlgmr.msra.gmra.mrb[22].mxu0 %vm186_vm2, %v1632_v36 }
0x10a8   :  { %2829 = vmatmul.mubr.msk.f32.vlgmr.msra.gmra.mrb[18].mxu1 %vm186_vm2, %v1707_v37  ;;  %3018 = vmatpush3.bf16.msra.mxu0 %v3257_v5 }
0x10a9   :  { %3019 = vmatprep.subr.bf16.mxu0 %v3222_v0  ;;  %2839 = vmatprep.mubr.msk.f32.mxu0 %vm3223_vm0, %v3224_v1 }
0x10aa   :  { %3024 = vmatpush3.bf16.msra.mxu1 %v3295_v35  ;;  %2850 = vmatprep.mubr.msk.f32.mxu1 %vm3223_vm0, %v3224_v1 }
0x10ab   :  { %3025 = vmatprep.subr.bf16.mxu1 %v3222_v0 }
0x10ac   :  { %3021 = vmatpush3.bf16.msra.mxu0 %v3268_v10 }
0x10ad   :  { %3028 = vmatprep.subr.bf16.mxu0 %v3222_v0 }
0x10ae   :  { %3027 = vmatpush3.bf16.msra.mxu1 %v3304_v41 }
0x10af   :  { %2840 = vmatmul.mubr.msk.f32.vlgmr.msra.gmra.mrb[24].mxu0 %vm186_vm2, %v1707_v37  ;;  %3034 = vmatprep.subr.bf16.mxu1 %v3222_v0 }
0x10b0   :  { %3030 = vmatpush3.bf16.msra.mxu0 %v3287_v31  ;;  %2861 = vmatprep.mubr.msk.f32.mxu0 %vm3223_vm0, %v3224_v1 }
0x10b1   :  { %3031 = vmatprep.subr.bf16.mxu0 %v3222_v0 }
0x10b4   :  { %3033 = vmatpush3.bf16.msra.mxu0 %v3306_v42 }
0x10b5   :  { %3040 = vmatprep.subr.bf16.mxu0 %v3222_v0 }
0x117a   :  { %v1701_v38 = vpop.f32.mrb[22].mxu0 }
0x117b   :  { %v1776_v39 = vpop.f32.mrb[18].mxu1  ;;  %v2819_v40 = vpop.f32.mrb[23].mxu0 }
0x117c   :  { %v1777_v49 = vadd.f32 %v1776_v39, %v1701_v38  ;;  %v2830_v43 = vpop.f32.mrb[19].mxu1 }
0x117e   :  { %v1780_v44 = vadd.f32 %v3366_v59, %v1777_v49 }
0x1180   :  { %3154 = vtanh.f32 %v1780_v44  ;;  %v2472_v57 = vmul.f32 -1.442695, %v1780_v44 }
0x1182   :  { %v1871_v46 = vpop.f32.mrb[24].mxu0 }
0x1183   :  { %v1875_v47 = vadd.f32 %v1871_v46, %v161_v45  ;;  %v2841_v48 = vpop.f32.mrb[25].mxu0 }
0x1185   :  { %3156 = vtanh.f32 %v1875_v47  ;;  %v2474_v58 = vmul.f32 -1.442695, %v1875_v47 }
0x1186   :  { %3158 = vpow2.f32 %v2472_v57 }
0x1187   :  { %3160 = vpow2.f32 %v2474_v58 }
0x118a   :  { %v3155_v53 = vpop.eup %3154 }
0x118b   :  { %1790 = vrot.lane.b32.xlu0 %v3155_v53, %s3225_s26 }
0x118f   :  { %v3157_v55 = vpop.eup %3156 }
0x1190   :  { %1885 = vrot.lane.b32.xlu1 %v3157_v55, %s3225_s26  ;;  %v3159_v60 = vpop.eup %3158 }
0x1191   :  { %v1784_v61 = vadd.f32 1.0, %v3159_v60  ;;  %v3161_v62 = vpop.eup %3160 }
0x1192   :  { %v1879_v63 = vadd.f32 1.0, %v3161_v62 }
0x1193   :  { %3162 = vrcp.f32 %v1784_v61 }
0x1194   :  { %3164 = vrcp.f32 %v1879_v63 }
0x119d   :  { %v3163_v12 = vpop.eup %3162 }
0x119e   :  { %v3165_v50 = vpop.eup %3164  ;;  %v1788_v6 = vmul.f32 %v3163_v12, %v3534_v28 }
0x119f   :  { %v1883_v9 = vmul.f32 %v3165_v50, %v3536_v29 }
0x11fd   :  { %v1791_v56 = vpop.permute.xlu0 %1790 }
0x11fe   :  { %v1793_v2 = vmul.f32 %v3163_v12, %v1791_v56 }
0x1200   :  { %1795 = vrot.lane.b32.xlu0 %v1793_v2, %s3226_s27 }
0x1202   :  { %v1886_v3 = vpop.permute.xlu1 %1885 }
0x1203   :  { %v1888_v4 = vmul.f32 %v3165_v50, %v1886_v3 }
0x1205   :  { %1890 = vrot.lane.b32.xlu1 %v1888_v4, %s3226_s27 }
0x1272   :  { %v1796_v7 = vpop.permute.xlu0 %1795 }
0x1273   :  { %v3573_v8 = vadd.f32 %v1796_v7, %v1788_v6 }
0x1275   :  { %3166 = vtanh.f32 %v3573_v8 }
0x1277   :  { %v1891_v11 = vpop.permute.xlu1 %1890 }
0x1278   :  { %v3577_v13 = vadd.f32 %v1891_v11, %v1883_v9 }
0x127a   :  { %3168 = vtanh.f32 %v3577_v13 }
0x127f   :  { %v3167_v14 = vpop.eup %3166 }
0x1280   :  { %1801 = vrot.lane.b32.xlu0 %v3167_v14, %s3225_s26 }
0x1284   :  { %v3169_v15 = vpop.eup %3168 }
0x1285   :  { %1896 = vrot.lane.b32.xlu1 %v3169_v15, %s3225_s26  ;;  %v2345_v15 = vld [vmem:[#allocation2 + $0x68] sm:$0xff] }
0x12f2   :  { %v1802_v51 = vpop.permute.xlu0 %1801 }
0x12f3   :  { %v1804_v16 = vmul.f32 %v3163_v12, %v1802_v51  ;;  %v2347_v51 = vld [vmem:[#allocation2 + $0x78] sm:$0xff] }
0x12f5   :  { %1901 = vrot.lane.b32.xlu0 %v1804_v16, %s3226_s27 }
0x12f7   :  { %v1897_v17 = vpop.permute.xlu1 %1896 }
0x12f8   :  { %v1899_v18 = vmul.f32 %v3165_v50, %v1897_v17  ;;  %v2348_v17 = vld [vmem:[#allocation2 + $0x80] sm:$0xff] }
0x12fa   :  { %1976 = vrot.lane.b32.xlu1 %v1899_v18, %s3226_s27  ;;  %v3056_v18 = vpack.c.bf16 %v2348_v17, %v2347_v51 }
0x1367   :  { %v1902_v19 = vpop.permute.xlu0 %1901 }
0x1368   :  { %2851 = vmatmul.mubr.msk.f32.vlgmr.msra.gmra.mrb[20].mxu1 %vm186_vm2, %v1902_v19 }
0x1369   :  { %3036 = vmatpush3.bf16.msra.mxu1 %v3257_v5  ;;  %2872 = vmatprep.mubr.msk.f32.mxu1 %vm3223_vm0, %v3224_v1 }
0x136a   :  { %3037 = vmatprep.subr.bf16.mxu1 %v3222_v0 }
0x136c   :  { %v1977_v20 = vpop.permute.xlu1 %1976 }
0x136d   :  { %3039 = vmatpush3.bf16.msra.mxu1 %v3268_v10  ;;  %2862 = vmatmul.mubr.msk.f32.vlgmr.msra.gmra.mrb[26].mxu0 %vm186_vm2, %v1977_v20 }
0x136e   :  { %3046 = vmatprep.subr.bf16.mxu1 %v3222_v0  ;;  %3042 = vmatpush3.bf16.msra.mxu0 %v3295_v35 }
0x136f   :  { %3043 = vmatprep.subr.bf16.mxu0 %v3222_v0  ;;  %2883 = vmatprep.mubr.msk.f32.mxu0 %vm3223_vm0, %v3224_v1 }
0x1370   :  { %2873 = vmatmul.mubr.msk.f32.vlgmr.msra.gmra.mrb[22].mxu1 %vm186_vm2, %v1977_v20 }
0x1371   :  { %3048 = vmatpush3.bf16.msra.mxu1 %v3287_v31  ;;  %2894 = vmatprep.mubr.msk.f32.mxu1 %vm3223_vm0, %v3224_v1 }
0x1372   :  { %3049 = vmatprep.subr.bf16.mxu1 %v3222_v0  ;;  %3045 = vmatpush3.bf16.msra.mxu0 %v3304_v41 }
0x1373   :  { %3052 = vmatprep.subr.bf16.mxu0 %v3222_v0 }
0x1375   :  { %3051 = vmatpush3.bf16.msra.mxu1 %v3306_v42 }
0x143b   :  { %v1971_v5 = vpop.f32.mrb[20].mxu1 }
0x143c   :  { %v2852_v10 = vpop.f32.mrb[21].mxu1 }
0x1440   :  { %v2046_v35 = vpop.f32.mrb[26].mxu0 }
0x1441   :  { %v2047_v21 = vadd.f32 %v2046_v35, %v1971_v5  ;;  %v2863_v22 = vpop.f32.mrb[27].mxu0  ;;  %v2483_v35 = vld [vmem:[#allocation2 + $0x8a] ss:$0 sm:$0xff] }
0x1443   :  { %v2050_v31 = vadd.f32 %v3366_v59, %v2047_v21  ;;  %v2141_v25 = vpop.f32.mrb[22].mxu1 }
0x1444   :  { %v2145_v26 = vadd.f32 %v2141_v25, %v166_v24  ;;  %v2874_v28 = vpop.f32.mrb[23].mxu1 }
0x1445   :  { %3170 = vtanh.f32 %v2050_v31  ;;  %v2477_v42 = vmul.f32 -1.442695, %v2050_v31 }
0x1446   :  { %3172 = vtanh.f32 %v2145_v26  ;;  %v2479_v30 = vmul.f32 -1.442695, %v2145_v26 }
0x1447   :  { %3174 = vpow2.f32 %v2477_v42 }
0x1448   :  { %3176 = vpow2.f32 %v2479_v30 }
0x144f   :  { %v3171_v41 = vpop.eup %3170 }
0x1450   :  { %v3173_v29 = vpop.eup %3172  ;;  %2060 = vrot.lane.b32.xlu0 %v3171_v41, %s3225_s26 }
0x1451   :  { %2155 = vrot.lane.b32.xlu1 %v3173_v29, %s3225_s26  ;;  %v3175_v32 = vpop.eup %3174 }
0x1452   :  { %v3177_v52 = vpop.eup %3176  ;;  %v2054_v54 = vadd.f32 1.0, %v3175_v32 }
0x1453   :  { %v2149_v33 = vadd.f32 1.0, %v3177_v52 }
0x1454   :  { %3178 = vrcp.f32 %v2054_v54 }
0x1455   :  { %3180 = vrcp.f32 %v2149_v33 }
0x145e   :  { %v3179_v27 = vpop.eup %3178 }
0x145f   :  { %v3181_v36 = vpop.eup %3180  ;;  %v2058_v40 = vmul.f32 %v3179_v27, %v3573_v8 }
0x1460   :  { %v2153_v49 = vmul.f32 %v3181_v36, %v3577_v13 }
0x14c2   :  { %v2061_v34 = vpop.permute.xlu0 %2060 }
0x14c3   :  { %v2156_v37 = vpop.permute.xlu1 %2155  ;;  %v2063_v38 = vmul.f32 %v3179_v27, %v2061_v34 }
0x14c4   :  { %v2158_v39 = vmul.f32 %v3181_v36, %v2156_v37 }
0x14c5   :  { %2065 = vrot.lane.b32.xlu0 %v2063_v38, %s3226_s27 }
0x14c6   :  { %2160 = vrot.lane.b32.xlu1 %v2158_v39, %s3226_s27 }
0x1537   :  { %v2066_v43 = vpop.permute.xlu0 %2065 }
0x1538   :  { %v2161_v44 = vpop.permute.xlu1 %2160  ;;  %v2068_v45 = vadd.f32 %v2066_v43, %v2058_v40 }
0x1539   :  { %v2163_v46 = vadd.f32 %v2161_v44, %v2153_v49 }
0x153a   :  { %3182 = vtanh.f32 %v2068_v45 }
0x153b   :  { %3184 = vtanh.f32 %v2163_v46 }
0x1544   :  { %v3183_v47 = vpop.eup %3182 }
0x1545   :  { %v3185_v48 = vpop.eup %3184  ;;  %2071 = vrot.lane.b32.xlu0 %v3183_v47, %s3225_s26 }
0x1546   :  { %2166 = vrot.lane.b32.xlu1 %v3185_v48, %s3225_s26 }
0x15b7   :  { %v2072_v53 = vpop.permute.xlu0 %2071 }
0x15b8   :  { %v2167_v55 = vpop.permute.xlu1 %2166  ;;  %v2074_v57 = vmul.f32 %v3179_v27, %v2072_v53 }
0x15b9   :  { %v2169_v58 = vmul.f32 %v3181_v36, %v2167_v55 }
0x15ba   :  { %2171 = vrot.lane.b32.xlu0 %v2074_v57, %s3226_s27 }
0x15bb   :  { %2246 = vrot.lane.b32.xlu1 %v2169_v58, %s3226_s27 }
0x162c   :  { %v2172_v60 = vpop.permute.xlu0 %2171 }
0x162d   :  { %v2247_v61 = vpop.permute.xlu1 %2246  ;;  %2884 = vmatmul.mubr.msk.f32.vlgmr.msra.gmra.mrb[28].mxu0 %vm186_vm2, %v2172_v60 }
0x162e   :  { %2895 = vmatmul.mubr.msk.f32.vlgmr.msra.gmra.mrb[24].mxu1 %vm186_vm2, %v2247_v61  ;;  %2905 = vmatprep.mubr.msk.f32.mxu0 %vm3223_vm0, %v3224_v1 }
0x1700   :  { %v2241_v62 = vpop.f32.mrb[28].mxu0 }
0x1701   :  { %v2316_v63 = vpop.f32.mrb[24].mxu1  ;;  %v2885_v12 = vpop.f32.mrb[29].mxu0 }
0x1702   :  { %v2317_v56 = vadd.f32 %v2316_v63, %v2241_v62  ;;  %v2896_v2 = vpop.f32.mrb[25].mxu1 }
0x1704   :  { %v2320_v50 = vadd.f32 %v3366_v59, %v2317_v56  ;;  %v2346_v59 = vld [vmem:[#allocation2 + $0x70] sm:$0xff] }
0x1705   :  { %v3053_v16 = vpack.c.bf16 %v2346_v59, %v2345_v15 }
0x1706   :  { %3186 = vtanh.f32 %v2320_v50  ;;  %v2482_v4 = vmul.f32 -1.442695, %v2320_v50 }
0x1707   :  { %3054 = vmatpush3.bf16.msra.mxu0 %v3053_v16 }
0x1708   :  { %3188 = vpow2.f32 %v2482_v4  ;;  %3055 = vmatprep.subr.bf16.mxu0 %v3222_v0 }
0x170b   :  { %3057 = vmatpush3.bf16.msra.mxu0 %v3056_v18 }
0x1710   :  { %v3187_v3 = vpop.eup %3186 }
0x1711   :  { %2330 = vrot.lane.b32.xlu0 %v3187_v3, %s3225_s26 }
0x1712   :  { %v3189_v6 = vpop.eup %3188 }
0x1713   :  { %v2324_v7 = vadd.f32 1.0, %v3189_v6 }
0x1715   :  { %3190 = vrcp.f32 %v2324_v7 }
0x171f   :  { %v3191_v8 = vpop.eup %3190 }
0x1720   :  { %v2328_v1 = vmul.f32 %v3191_v8, %v2068_v45 }
0x1783   :  { %v2331_v9 = vpop.permute.xlu0 %2330 }
0x1784   :  { %v2333_v11 = vmul.f32 %v3191_v8, %v2331_v9 }
0x1786   :  { %2335 = vrot.lane.b32.xlu1 %v2333_v11, %s3226_s27 }
0x17f8   :  { %v2336_v13 = vpop.permute.xlu1 %2335 }
0x17f9   :  { %v2338_v14 = vadd.f32 %v2336_v13, %v2328_v1 }
0x17fb   :  { %3192 = vtanh.f32 %v2338_v14 }
0x1805   :  { %v3193_v19 = vpop.eup %3192 }
0x1806   :  { %2341 = vrot.lane.b32.xlu0 %v3193_v19, %s3225_s26 }
0x1878   :  { %v2342_v20 = vpop.permute.xlu0 %2341 }
0x1879   :  { %v2344_v5 = vmul.f32 %v3191_v8, %v2342_v20 }
0x187b   :  { %2355 = vrot.lane.b32.xlu1 %v2344_v5, %s3226_s27 }
0x18ed   :  { %v2356_v10 = vpop.permute.xlu1 %2355 }
0x18ee   :  { %2906 = vmatmul.mubr.msk.f32.vlgmr.msra.gmra.mrb[30].mxu0 %vm186_vm2, %v2356_v10 }
0x19c1   :  { %v2425_v21 = vpop.f32.mrb[30].mxu0 }
0x19c2   :  { %v2426_v22 = vadd.f32 %v2483_v35, %v2425_v21  ;;  %v2907_v23 = vpop.f32.mrb[31].mxu0 }
0x19c4   :  { %2429 = vst [vmem:[%s3632_s2] sm:$0xff] %v2426_v22 }
0x19c5   :  { %2434 = vsyncpa [#allocation3], 1 }

</bundles_post_ra>
